<compile_context>
chip_gen: v5e
topology: v5e:2x2
jax: 0.10.0
libtpu: 0.0.40
codegen_flags: <defaults>
</compile_context>

<pallas_src>
import math
from functools import partial

import jax
import jax.numpy as jnp
from jax import lax
from jax.experimental import pallas as pl
from jax.experimental.pallas import tpu as pltpu


# ---------------------------------------------------------------------------
# Kernels
# ---------------------------------------------------------------------------

def _mha_weights_kernel(q_ref, k_ref, v_ref,
                        wqt_ref, wkt_ref, wvt_ref, wot_ref,
                        bq_ref, bk_ref, bv_ref, bo_ref,
                        out_ref, attnw_ref,
                        *, num_heads, head_dim, compute_dtype):
    """need_weights=True path. Grid: (N, L_tiles). Full S per step (needed for the
    normalized, head-averaged attention weights output). Per-head static loop keeps
    only (L_tile, S)-sized live tensors instead of (H, L_tile, S)."""
    H, D = num_heads, head_dim

    xq = q_ref[0].astype(compute_dtype)        # (L_t, E)
    xk = k_ref[0].astype(compute_dtype)        # (S,   E)
    xv = v_ref[0].astype(compute_dtype)        # (S,   E)

    L_t = xq.shape[0]
    S = xk.shape[0]
    E = out_ref.shape[-1]

    out_acc = jnp.zeros((L_t, E), jnp.float32)
    attnw_acc = jnp.zeros((L_t, S), jnp.float32)

    for h in range(H):                         # static unrolled loop over heads
        sl = slice(h * D, (h + 1) * D)
        # Per-head projections: x @ WqT[:, hD:(h+1)D]  (scaling already folded into WqT/bq).
        q_h = (jnp.dot(xq, wqt_ref[:, sl], preferred_element_type=jnp.float32)
               + bq_ref[:, sl]).astype(compute_dtype)                      # (L_t, D)
        k_h = (jnp.dot(xk, wkt_ref[:, sl], preferred_element_type=jnp.float32)
               + bk_ref[:, sl]).astype(compute_dtype)                      # (S,   D)
        v_h = (jnp.dot(xv, wvt_ref[:, sl], preferred_element_type=jnp.float32)
               + bv_ref[:, sl]).astype(compute_dtype)                      # (S,   D)

        # scores (L_t, S): contract the D axis of both operands (no explicit transpose).
        s = lax.dot_general(q_h, k_h, (((1,), (1,)), ((), ())),
                            preferred_element_type=jnp.float32)
        m = s.max(axis=-1, keepdims=True)
        p = jnp.exp(s - m)
        inv_l = pl.reciprocal(p.sum(axis=-1, keepdims=True), approx=False)  # (L_t, 1)
        attn = p * inv_l                                                    # (L_t, S)
        attnw_acc = attnw_acc + attn

        ctx_h = jnp.dot(attn.astype(compute_dtype), v_h,
                        preferred_element_type=jnp.float32)                 # (L_t, D)
        # Fold the head reduction into the output projection.
        out_acc = out_acc + jnp.dot(ctx_h.astype(compute_dtype), wot_ref[sl, :],
                                    preferred_element_type=jnp.float32)

    out_ref[0] = (out_acc + bo_ref[...]).astype(out_ref.dtype)
    attnw_ref[0] = (attnw_acc * (1.0 / H)).astype(attnw_ref.dtype)


def _mha_flash_kernel(q_ref, k_ref, v_ref,
                      wqt_ref, wkt_ref, wvt_ref, wot_ref,
                      bq_ref, bk_ref, bv_ref, bo_ref,
                      out_ref,
                      q_scr, m_scr, l_scr, acc_scr,
                      *, num_heads, head_dim, compute_dtype):
    """need_weights=False fast path. Grid: (N, L_tiles, S_tiles) with S last (reduction).
    Online softmax; q projection computed once per (n, lt) at st == 0 into scratch; k/v tile
    projections computed per S-tile. VMEM is bounded by O(L_tile * (E + S_tile))."""
    H, D = num_heads, head_dim
    st = pl.program_id(2)
    n_st = pl.num_programs(2)

    @pl.when(st == 0)
    def _init():
        xq = q_ref[0].astype(compute_dtype)                                 # (L_t, E)
        qp = jnp.dot(xq, wqt_ref[...], preferred_element_type=jnp.float32) + bq_ref[...]
        q_scr[...] = qp.astype(compute_dtype)
        m_scr[...] = jnp.full(m_scr.shape, -jnp.inf, jnp.float32)
        l_scr[...] = jnp.zeros(l_scr.shape, jnp.float32)
        acc_scr[...] = jnp.zeros(acc_scr.shape, jnp.float32)

    xk = k_ref[0].astype(compute_dtype)                                     # (S_t, E)
    xv = v_ref[0].astype(compute_dtype)                                     # (S_t, E)

    for h in range(H):                                                      # static loop
        sl = slice(h * D, (h + 1) * D)
        k_h = (jnp.dot(xk, wkt_ref[:, sl], preferred_element_type=jnp.float32)
               + bk_ref[:, sl]).astype(compute_dtype)                       # (S_t, D)
        v_h = (jnp.dot(xv, wvt_ref[:, sl], preferred_element_type=jnp.float32)
               + bv_ref[:, sl]).astype(compute_dtype)                       # (S_t, D)
        q_h = q_scr[:, sl]                                                  # (L_t, D)

        s = lax.dot_general(q_h, k_h, (((1,), (1,)), ((), ())),
                            preferred_element_type=jnp.float32)             # (L_t, S_t)
        m_prev = m_scr[h]                                                   # (L_t, 1)
        m_new = jnp.maximum(m_prev, s.max(axis=-1, keepdims=True))
        alpha = jnp.exp(m_prev - m_new)
        p = jnp.exp(s - m_new)
        l_scr[h] = alpha * l_scr[h] + p.sum(axis=-1, keepdims=True)
        acc_scr[:, sl] = alpha * acc_scr[:, sl] + jnp.dot(
            p.astype(compute_dtype), v_h, preferred_element_type=jnp.float32)
        m_scr[h] = m_new

    @pl.when(st == n_st - 1)
    def _finalize():
        E = out_ref.shape[-1]
        L_t = q_scr.shape[0]
        out_acc = jnp.zeros((L_t, E), jnp.float32)
        for h in range(H):
            sl = slice(h * D, (h + 1) * D)
            inv_h = pl.reciprocal(l_scr[h], approx=False)                   # (L_t, 1)
            # Normalize ctx (L_t, D) instead of attn (L_t, S); fold head reduction into Wo.
            ctx_h = (acc_scr[:, sl] * inv_h).astype(compute_dtype)
            out_acc = out_acc + jnp.dot(ctx_h, wot_ref[sl, :],
                                        preferred_element_type=jnp.float32)
        out_ref[0] = (out_acc + bo_ref[...]).astype(out_ref.dtype)


# ---------------------------------------------------------------------------
# Wrapper
# ---------------------------------------------------------------------------

def _pick_tile(dim, target):
    """Largest power-of-two-ish divisor of `dim` that is <= target (falls back to full dim)."""
    if dim <= target:
        return dim
    t = target
    while t >= 8:
        if dim % t == 0:
            return t
        t //= 2
    return dim


def _cost_estimate(N, L, S, E, H, itemsize, need_weights):
    flops = 2 * N * (2 * L * E * E + 2 * S * E * E + 2 * L * S * E)
    transcendentals = N * H * L * S
    bytes_accessed = itemsize * (N * (2 * L * E + 2 * S * E) + 4 * E * E + 4 * E)
    if need_weights:
        bytes_accessed += 4 * N * L * S
    return pl.CostEstimate(flops=flops, transcendentals=transcendentals,
                           bytes_accessed=bytes_accessed)


def multi_head_attention(query, key, value, params, *, embed_dim, num_heads,
                         need_weights=True, compute_dtype=None,
                         l_tile=128, s_tile=512):
    """query/key/value: (L, N, E) / (S, N, E) / (S, N, E), PyTorch seq-first layout.

    Returns (attn_output (L, N, E), attn_weights (N, L, S) or None)."""
    assert embed_dim % num_heads == 0
    head_dim = embed_dim // num_heads
    scaling = head_dim ** (-0.5)

    L, N, E = query.shape
    S = key.shape[0]
    assert E == embed_dim

    cdt = jnp.dtype(compute_dtype) if compute_dtype is not None else jnp.dtype(query.dtype)

    # Batch-major for the kernel.
    q_b = jnp.transpose(query, (1, 0, 2))   # (N, L, E)
    k_b = jnp.transpose(key, (1, 0, 2))     # (N, S, E)
    v_b = jnp.transpose(value, (1, 0, 2))   # (N, S, E)

    # Pre-transposed projection weights (x @ W.T == x @ W_T); q scaling folded into Wq / bq.
    wqt = (params['wq'] * scaling).T.astype(cdt)     # (E, E)
    wkt = params['wk'].T.astype(cdt)
    wvt = params['wv'].T.astype(cdt)
    wot = params['wo'].T.astype(cdt)
    bq = (params['bq'] * scaling).reshape(1, E).astype(jnp.float32)
    bk = params['bk'].reshape(1, E).astype(jnp.float32)
    bv = params['bv'].reshape(1, E).astype(jnp.float32)
    bo = params['bo'].reshape(1, E).astype(jnp.float32)

    L_t = _pick_tile(L, l_tile)

    # Weights / biases: whole-array VMEM residents (loaded once, not double-buffered).
    vmem_resident = pl.BlockSpec(memory_space=pltpu.MemorySpace.VMEM)
    weight_specs = [vmem_resident] * 8

    cost = _cost_estimate(N, L, S, E, num_heads, jnp.dtype(query.dtype).itemsize,
                          need_weights)
    # Budget tiles well under v7x's 64 MiB physical VMEM; be explicit about the limit.
    vmem_limit = 64 * 1024 * 1024

    if need_weights:
        kernel = partial(_mha_weights_kernel, num_heads=num_heads,
                         head_dim=head_dim, compute_dtype=cdt)
        out_b, attnw = pl.pallas_call(
            kernel,
            out_shape=(jax.ShapeDtypeStruct((N, L, E), query.dtype),
                       jax.ShapeDtypeStruct((N, L, S), jnp.float32)),
            grid_spec=pltpu.PrefetchScalarGridSpec(
                num_scalar_prefetch=0,
                grid=(N, L // L_t),
                in_specs=[
                    pl.BlockSpec((1, L_t, E), lambda n, lt: (n, lt, 0)),   # q
                    pl.BlockSpec((1, S, E), lambda n, lt: (n, 0, 0)),      # k
                    pl.BlockSpec((1, S, E), lambda n, lt: (n, 0, 0)),      # v
                    *weight_specs,
                ],
                out_specs=[
                    pl.BlockSpec((1, L_t, E), lambda n, lt: (n, lt, 0)),
                    pl.BlockSpec((1, L_t, S), lambda n, lt: (n, lt, 0)),
                ],
            ),
            compiler_params=pltpu.CompilerParams(
                dimension_semantics=("parallel", "parallel"),
                vmem_limit_bytes=vmem_limit),
            cost_estimate=cost,
        )(q_b, k_b, v_b, wqt, wkt, wvt, wot, bq, bk, bv, bo)
        attn_out = jnp.transpose(out_b, (1, 0, 2))   # back to (L, N, E)
        return attn_out, attnw

    # --- need_weights=False: flash-style S-tiled online softmax -------------
    S_t = _pick_tile(S, s_tile)
    kernel = partial(_mha_flash_kernel, num_heads=num_heads,
                     head_dim=head_dim, compute_dtype=cdt)
    out_b = pl.pallas_call(
        kernel,
        out_shape=jax.ShapeDtypeStruct((N, L, E), query.dtype),
        grid_spec=pltpu.PrefetchScalarGridSpec(
            num_scalar_prefetch=0,
            grid=(N, L // L_t, S // S_t),
            in_specs=[
                pl.BlockSpec((1, L_t, E), lambda n, lt, st: (n, lt, 0)),   # q
                pl.BlockSpec((1, S_t, E), lambda n, lt, st: (n, st, 0)),   # k
                pl.BlockSpec((1, S_t, E), lambda n, lt, st: (n, st, 0)),   # v
                *weight_specs,
            ],
            out_specs=pl.BlockSpec((1, L_t, E), lambda n, lt, st: (n, lt, 0)),
            scratch_shapes=[
                pltpu.VMEM((L_t, E), cdt),                        # projected q (scaled)
                pltpu.VMEM((num_heads, L_t, 1), jnp.float32),     # running max m
                pltpu.VMEM((num_heads, L_t, 1), jnp.float32),     # running denom l
                pltpu.VMEM((L_t, E), jnp.float32),                # unnormalized ctx acc
            ],
        ),
        compiler_params=pltpu.CompilerParams(
            dimension_semantics=("parallel", "parallel", "arbitrary"),
            vmem_limit_bytes=vmem_limit),
        cost_estimate=cost,
    )(q_b, k_b, v_b, wqt, wkt, wvt, wot, bq, bk, bv, bo)
    attn_out = jnp.transpose(out_b, (1, 0, 2))
    return attn_out, None


# ---------------------------------------------------------------------------
# Params / reference
# ---------------------------------------------------------------------------

def _xavier_uniform(key, shape, gain=1.0):
    fan_out, fan_in = shape
    a = gain * math.sqrt(6.0 / (fan_in + fan_out))
    return jax.random.uniform(key, shape, jnp.float32, -a, a)


def init_params(key, embed_dim):
    # Mirrors MultiHeadAttention.reset_parameters (qkv_same_dim=True case).
    ks = jax.random.split(key, 4)
    g = 1.0 / math.sqrt(2.0)
    return {
        'wq': _xavier_uniform(ks[0], (embed_dim, embed_dim), gain=g),
        'wk': _xavier_uniform(ks[1], (embed_dim, embed_dim), gain=g),
        'wv': _xavier_uniform(ks[2], (embed_dim, embed_dim), gain=g),
        'wo': _xavier_uniform(ks[3], (embed_dim, embed_dim), gain=1.0),
        'bq': jnp.zeros((embed_dim,), jnp.float32),
        'bk': jnp.zeros((embed_dim,), jnp.float32),
        'bv': jnp.zeros((embed_dim,), jnp.float32),
        'bo': jnp.zeros((embed_dim,), jnp.float32),
    }


def _reference(query, key, value, params, *, embed_dim, num_heads):
    # Pure-JAX reference of F.multi_head_attention_forward (eval, no masks).
    head_dim = embed_dim // num_heads
    scaling = head_dim ** (-0.5)
    L, N, E = query.shape
    S = key.shape[0]
    q = query @ params['wq'].T + params['bq']
    k = key @ params['wk'].T + params['bk']
    v = value @ params['wv'].T + params['bv']
    q = q * scaling
    qh = q.reshape(L, N * num_heads, head_dim).transpose(1, 0, 2)
    kh = k.reshape(S, N * num_heads, head_dim).transpose(1, 0, 2)
    vh = v.reshape(S, N * num_heads, head_dim).transpose(1, 0, 2)
    scores = jnp.einsum('bld,bsd->bls', qh, kh)
    attn = jax.nn.softmax(scores, axis=-1)
    ctx = jnp.einsum('bls,bsd->bld', attn, vh)
    ctx = ctx.transpose(1, 0, 2).reshape(L, N, E)
    out = ctx @ params['wo'].T + params['bo']
    attn_avg = attn.reshape(N, num_heads, L, S).mean(axis=1)
    return out, attn_avg


# TODO(synk): key_padding_mask / attn_mask / bias_kv / add_zero_attn branches (inactive in the
# default eval forward) are not implemented.

if __name__ == "__main__":
    def run_case(L, N, E, H, l_tile=128, s_tile=512):
        root = jax.random.PRNGKey(0)
        kp, kq = jax.random.split(root)
        params = init_params(kp, E)
        query = jax.random.normal(kq, (L, N, E), jnp.float32)
        key = query
        value = query
        ref_out, ref_attn = _reference(query, key, value, params,
                                       embed_dim=E, num_heads=H)

        # need_weights=True path (matches PyTorch default semantics)
        out, attn_w = multi_head_attention(query, key, value, params,
                                           embed_dim=E, num_heads=H,
                                           need_weights=True,
                                           l_tile=l_tile, s_tile=s_tile)
        out = jax.block_until_ready(out)
        attn_w = jax.block_until_ready(attn_w)
        assert out.shape == (L, N, E)
        assert attn_w.shape == (N, L, L)
        assert jnp.allclose(out, ref_out, atol=1e-4, rtol=1e-4)
        assert jnp.allclose(attn_w, ref_attn, atol=1e-4, rtol=1e-4)

        # need_weights=False flash path
        out_f, w_none = multi_head_attention(query, key, value, params,
                                             embed_dim=E, num_heads=H,
                                             need_weights=False,
                                             l_tile=l_tile, s_tile=s_tile)
        out_f = jax.block_until_ready(out_f)
        assert w_none is None
        assert jnp.allclose(out_f, ref_out, atol=1e-4, rtol=1e-4)
        return query, params, ref_out, ref_attn

    # Small case (matches the original module demo shapes).
    EMBED_DIM, NUM_HEADS, SEQ, BATCH = 32, 4, 8, 2
    q_small, p_small, ref_out, ref_attn = run_case(SEQ, BATCH, EMBED_DIM, NUM_HEADS)

    # bf16 MXU path on the small case (f32 accumulation; looser tolerance).
    out_bf, attn_bf = multi_head_attention(q_small, q_small, q_small, p_small,
                                           embed_dim=EMBED_DIM, num_heads=NUM_HEADS,
                                           need_weights=True,
                                           compute_dtype=jnp.bfloat16)
    out_bf = jax.block_until_ready(out_bf)
    attn_bf = jax.block_until_ready(attn_bf)
    assert jnp.allclose(out_bf, ref_out, atol=5e-2, rtol=5e-2)
    assert jnp.allclose(attn_bf, ref_attn, atol=2e-2, rtol=2e-2)

    # Larger case exercising the L tiling and the multi-tile online-softmax S loop.
    run_case(256, 2, 128, 8, l_tile=128, s_tile=128)

    print("KERNEL_OK")
</pallas_src>

<mosaic_0001>
module attributes {stable_mosaic.version = 11 : i64} {
  func.func @_mha_weights_kernel(%arg0: i32, %arg1: i32, %arg2: memref<1x8x32xf32, #tpu.memory_space<vmem>>, %arg3: memref<1x8x32xf32, #tpu.memory_space<vmem>>, %arg4: memref<1x8x32xf32, #tpu.memory_space<vmem>>, %arg5: memref<32x32xf32, #tpu.memory_space<vmem>>, %arg6: memref<32x32xf32, #tpu.memory_space<vmem>>, %arg7: memref<32x32xf32, #tpu.memory_space<vmem>>, %arg8: memref<32x32xf32, #tpu.memory_space<vmem>>, %arg9: memref<1x32xf32, #tpu.memory_space<vmem>>, %arg10: memref<1x32xf32, #tpu.memory_space<vmem>>, %arg11: memref<1x32xf32, #tpu.memory_space<vmem>>, %arg12: memref<1x32xf32, #tpu.memory_space<vmem>>, %arg13: memref<1x8x32xf32, #tpu.memory_space<vmem>>, %arg14: memref<1x8x8xf32, #tpu.memory_space<vmem>>) attributes {dimension_semantics = [#tpu.dimension_semantics<parallel>, #tpu.dimension_semantics<parallel>], iteration_bounds = array<i64: 2, 1>, scalar_prefetch = 0 : i64, scratch_operands = 0 : i64, tpu.core_type = #tpu.core_type<tc>, window_params = [{transform_indices = @transform_0, window_bounds = array<i64: 1, 8, 32>}, {transform_indices = @transform_1, window_bounds = array<i64: 1, 8, 32>}, {transform_indices = @transform_2, window_bounds = array<i64: 1, 8, 32>}, {pipeline_mode = #tpu.pipeline_mode<synchronous>, transform_indices = @transform_3, window_bounds = array<i64: 32, 32>}, {pipeline_mode = #tpu.pipeline_mode<synchronous>, transform_indices = @transform_4, window_bounds = array<i64: 32, 32>}, {pipeline_mode = #tpu.pipeline_mode<synchronous>, transform_indices = @transform_5, window_bounds = array<i64: 32, 32>}, {pipeline_mode = #tpu.pipeline_mode<synchronous>, transform_indices = @transform_6, window_bounds = array<i64: 32, 32>}, {pipeline_mode = #tpu.pipeline_mode<synchronous>, transform_indices = @transform_7, window_bounds = array<i64: 1, 32>}, {pipeline_mode = #tpu.pipeline_mode<synchronous>, transform_indices = @transform_8, window_bounds = array<i64: 1, 32>}, {pipeline_mode = #tpu.pipeline_mode<synchronous>, transform_indices = @transform_9, window_bounds = array<i64: 1, 32>}, {pipeline_mode = #tpu.pipeline_mode<synchronous>, transform_indices = @transform_10, window_bounds = array<i64: 1, 32>}, {transform_indices = @transform_11, window_bounds = array<i64: 1, 8, 32>}, {transform_indices = @transform_12, window_bounds = array<i64: 1, 8, 8>}]} {
    %c0 = arith.constant 0 : index
    %c0_0 = arith.constant 0 : index
    %c0_1 = arith.constant 0 : index
    %0 = vector.load %arg2[%c0, %c0_0, %c0_1] : memref<1x8x32xf32, #tpu.memory_space<vmem>>, vector<1x8x32xf32>
    %1 = vector.shape_cast %0 : vector<1x8x32xf32> to vector<8x32xf32>
    %c0_2 = arith.constant 0 : index
    %c0_3 = arith.constant 0 : index
    %c0_4 = arith.constant 0 : index
    %2 = vector.load %arg3[%c0_2, %c0_3, %c0_4] : memref<1x8x32xf32, #tpu.memory_space<vmem>>, vector<1x8x32xf32>
    %3 = vector.shape_cast %2 : vector<1x8x32xf32> to vector<8x32xf32>
    %c0_5 = arith.constant 0 : index
    %c0_6 = arith.constant 0 : index
    %c0_7 = arith.constant 0 : index
    %4 = vector.load %arg4[%c0_5, %c0_6, %c0_7] : memref<1x8x32xf32, #tpu.memory_space<vmem>>, vector<1x8x32xf32>
    %5 = vector.shape_cast %4 : vector<1x8x32xf32> to vector<8x32xf32>
    %cst = arith.constant 0.000000e+00 : f32
    %6 = vector.broadcast %cst : f32 to vector<8x32xf32>
    %cst_8 = arith.constant 0.000000e+00 : f32
    %7 = vector.broadcast %cst_8 : f32 to vector<8x8xf32>
    %c0_9 = arith.constant 0 : index
    %c0_10 = arith.constant 0 : index
    %8 = vector.load %arg5[%c0_9, %c0_10] : memref<32x32xf32, #tpu.memory_space<vmem>>, vector<32x8xf32>
    %cst_11 = arith.constant dense<0.000000e+00> : vector<8x8xf32>
    %9 = tpu.matmul %1, %8, %cst_11 {dimension_numbers = #tpu.dot_dimension_numbers<[1], [0], [0], [1], [0, 0, 1, 1], [], []>} : vector<8x32xf32>, vector<32x8xf32>, vector<8x8xf32> -> vector<8x8xf32>
    %c0_12 = arith.constant 0 : index
    %c0_13 = arith.constant 0 : index
    %10 = vector.load %arg9[%c0_12, %c0_13] : memref<1x32xf32, #tpu.memory_space<vmem>>, vector<1x8xf32>
    %11 = vector.broadcast %10 : vector<1x8xf32> to vector<8x8xf32>
    %12 = arith.addf %9, %11 : vector<8x8xf32>
    %c0_14 = arith.constant 0 : index
    %c0_15 = arith.constant 0 : index
    %13 = vector.load %arg6[%c0_14, %c0_15] : memref<32x32xf32, #tpu.memory_space<vmem>>, vector<32x8xf32>
    %cst_16 = arith.constant dense<0.000000e+00> : vector<8x8xf32>
    %14 = tpu.matmul %3, %13, %cst_16 {dimension_numbers = #tpu.dot_dimension_numbers<[1], [0], [0], [1], [0, 0, 1, 1], [], []>} : vector<8x32xf32>, vector<32x8xf32>, vector<8x8xf32> -> vector<8x8xf32>
    %c0_17 = arith.constant 0 : index
    %c0_18 = arith.constant 0 : index
    %15 = vector.load %arg10[%c0_17, %c0_18] : memref<1x32xf32, #tpu.memory_space<vmem>>, vector<1x8xf32>
    %16 = vector.broadcast %15 : vector<1x8xf32> to vector<8x8xf32>
    %17 = arith.addf %14, %16 : vector<8x8xf32>
    %c0_19 = arith.constant 0 : index
    %c0_20 = arith.constant 0 : index
    %18 = vector.load %arg7[%c0_19, %c0_20] : memref<32x32xf32, #tpu.memory_space<vmem>>, vector<32x8xf32>
    %cst_21 = arith.constant dense<0.000000e+00> : vector<8x8xf32>
    %19 = tpu.matmul %5, %18, %cst_21 {dimension_numbers = #tpu.dot_dimension_numbers<[1], [0], [0], [1], [0, 0, 1, 1], [], []>} : vector<8x32xf32>, vector<32x8xf32>, vector<8x8xf32> -> vector<8x8xf32>
    %c0_22 = arith.constant 0 : index
    %c0_23 = arith.constant 0 : index
    %20 = vector.load %arg11[%c0_22, %c0_23] : memref<1x32xf32, #tpu.memory_space<vmem>>, vector<1x8xf32>
    %21 = vector.broadcast %20 : vector<1x8xf32> to vector<8x8xf32>
    %22 = arith.addf %19, %21 : vector<8x8xf32>
    %cst_24 = arith.constant dense<0.000000e+00> : vector<8x8xf32>
    %23 = tpu.matmul %12, %17, %cst_24 {dimension_numbers = #tpu.dot_dimension_numbers<[1], [1], [0], [0], [0, 0, 1, 0], [], []>} : vector<8x8xf32>, vector<8x8xf32>, vector<8x8xf32> -> vector<8x8xf32>
    %cst_25 = arith.constant dense<0xFF800000> : vector<8xf32>
    %24 = vector.multi_reduction <maximumf>, %23, %cst_25 [1] : vector<8x8xf32> to vector<8xf32>
    %25 = vector.shape_cast %24 : vector<8xf32> to vector<8x1xf32>
    %26 = vector.broadcast %25 : vector<8x1xf32> to vector<8x8xf32>
    %27 = arith.subf %23, %26 : vector<8x8xf32>
    %28 = math.exp %27 : vector<8x8xf32>
    %cst_26 = arith.constant dense<0.000000e+00> : vector<8xf32>
    %29 = vector.multi_reduction <add>, %28, %cst_26 [1] : vector<8x8xf32> to vector<8xf32>
    %30 = vector.shape_cast %29 : vector<8xf32> to vector<8x1xf32>
    %31 = tpu.reciprocal %30 : vector<8x1xf32> -> vector<8x1xf32>
    %32 = vector.broadcast %31 : vector<8x1xf32> to vector<8x8xf32>
    %33 = arith.mulf %28, %32 : vector<8x8xf32>
    %34 = arith.addf %7, %33 : vector<8x8xf32>
    %cst_27 = arith.constant dense<0.000000e+00> : vector<8x8xf32>
    %35 = tpu.matmul %33, %22, %cst_27 {dimension_numbers = #tpu.dot_dimension_numbers<[1], [0], [0], [1], [0, 0, 1, 1], [], []>} : vector<8x8xf32>, vector<8x8xf32>, vector<8x8xf32> -> vector<8x8xf32>
    %c0_28 = arith.constant 0 : index
    %c0_29 = arith.constant 0 : index
    %36 = vector.load %arg8[%c0_28, %c0_29] : memref<32x32xf32, #tpu.memory_space<vmem>>, vector<8x32xf32>
    %cst_30 = arith.constant dense<0.000000e+00> : vector<8x32xf32>
    %37 = tpu.matmul %35, %36, %cst_30 {dimension_numbers = #tpu.dot_dimension_numbers<[1], [0], [0], [1], [0, 0, 1, 1], [], []>} : vector<8x8xf32>, vector<8x32xf32>, vector<8x32xf32> -> vector<8x32xf32>
    %38 = arith.addf %6, %37 : vector<8x32xf32>
    %c0_31 = arith.constant 0 : index
    %c8 = arith.constant 8 : index
    %39 = vector.load %arg5[%c0_31, %c8] : memref<32x32xf32, #tpu.memory_space<vmem>>, vector<32x8xf32>
    %cst_32 = arith.constant dense<0.000000e+00> : vector<8x8xf32>
    %40 = tpu.matmul %1, %39, %cst_32 {dimension_numbers = #tpu.dot_dimension_numbers<[1], [0], [0], [1], [0, 0, 1, 1], [], []>} : vector<8x32xf32>, vector<32x8xf32>, vector<8x8xf32> -> vector<8x8xf32>
    %c0_33 = arith.constant 0 : index
    %c8_34 = arith.constant 8 : index
    %41 = vector.load %arg9[%c0_33, %c8_34] : memref<1x32xf32, #tpu.memory_space<vmem>>, vector<1x8xf32>
    %42 = vector.broadcast %41 : vector<1x8xf32> to vector<8x8xf32>
    %43 = arith.addf %40, %42 : vector<8x8xf32>
    %c0_35 = arith.constant 0 : index
    %c8_36 = arith.constant 8 : index
    %44 = vector.load %arg6[%c0_35, %c8_36] : memref<32x32xf32, #tpu.memory_space<vmem>>, vector<32x8xf32>
    %cst_37 = arith.constant dense<0.000000e+00> : vector<8x8xf32>
    %45 = tpu.matmul %3, %44, %cst_37 {dimension_numbers = #tpu.dot_dimension_numbers<[1], [0], [0], [1], [0, 0, 1, 1], [], []>} : vector<8x32xf32>, vector<32x8xf32>, vector<8x8xf32> -> vector<8x8xf32>
    %c0_38 = arith.constant 0 : index
    %c8_39 = arith.constant 8 : index
    %46 = vector.load %arg10[%c0_38, %c8_39] : memref<1x32xf32, #tpu.memory_space<vmem>>, vector<1x8xf32>
    %47 = vector.broadcast %46 : vector<1x8xf32> to vector<8x8xf32>
    %48 = arith.addf %45, %47 : vector<8x8xf32>
    %c0_40 = arith.constant 0 : index
    %c8_41 = arith.constant 8 : index
    %49 = vector.load %arg7[%c0_40, %c8_41] : memref<32x32xf32, #tpu.memory_space<vmem>>, vector<32x8xf32>
    %cst_42 = arith.constant dense<0.000000e+00> : vector<8x8xf32>
    %50 = tpu.matmul %5, %49, %cst_42 {dimension_numbers = #tpu.dot_dimension_numbers<[1], [0], [0], [1], [0, 0, 1, 1], [], []>} : vector<8x32xf32>, vector<32x8xf32>, vector<8x8xf32> -> vector<8x8xf32>
    %c0_43 = arith.constant 0 : index
    %c8_44 = arith.constant 8 : index
    %51 = vector.load %arg11[%c0_43, %c8_44] : memref<1x32xf32, #tpu.memory_space<vmem>>, vector<1x8xf32>
    %52 = vector.broadcast %51 : vector<1x8xf32> to vector<8x8xf32>
    %53 = arith.addf %50, %52 : vector<8x8xf32>
    %cst_45 = arith.constant dense<0.000000e+00> : vector<8x8xf32>
    %54 = tpu.matmul %43, %48, %cst_45 {dimension_numbers = #tpu.dot_dimension_numbers<[1], [1], [0], [0], [0, 0, 1, 0], [], []>} : vector<8x8xf32>, vector<8x8xf32>, vector<8x8xf32> -> vector<8x8xf32>
    %cst_46 = arith.constant dense<0xFF800000> : vector<8xf32>
    %55 = vector.multi_reduction <maximumf>, %54, %cst_46 [1] : vector<8x8xf32> to vector<8xf32>
    %56 = vector.shape_cast %55 : vector<8xf32> to vector<8x1xf32>
    %57 = vector.broadcast %56 : vector<8x1xf32> to vector<8x8xf32>
    %58 = arith.subf %54, %57 : vector<8x8xf32>
    %59 = math.exp %58 : vector<8x8xf32>
    %cst_47 = arith.constant dense<0.000000e+00> : vector<8xf32>
    %60 = vector.multi_reduction <add>, %59, %cst_47 [1] : vector<8x8xf32> to vector<8xf32>
    %61 = vector.shape_cast %60 : vector<8xf32> to vector<8x1xf32>
    %62 = tpu.reciprocal %61 : vector<8x1xf32> -> vector<8x1xf32>
    %63 = vector.broadcast %62 : vector<8x1xf32> to vector<8x8xf32>
    %64 = arith.mulf %59, %63 : vector<8x8xf32>
    %65 = arith.addf %34, %64 : vector<8x8xf32>
    %cst_48 = arith.constant dense<0.000000e+00> : vector<8x8xf32>
    %66 = tpu.matmul %64, %53, %cst_48 {dimension_numbers = #tpu.dot_dimension_numbers<[1], [0], [0], [1], [0, 0, 1, 1], [], []>} : vector<8x8xf32>, vector<8x8xf32>, vector<8x8xf32> -> vector<8x8xf32>
    %c8_49 = arith.constant 8 : index
    %c0_50 = arith.constant 0 : index
    %67 = vector.load %arg8[%c8_49, %c0_50] : memref<32x32xf32, #tpu.memory_space<vmem>>, vector<8x32xf32>
    %cst_51 = arith.constant dense<0.000000e+00> : vector<8x32xf32>
    %68 = tpu.matmul %66, %67, %cst_51 {dimension_numbers = #tpu.dot_dimension_numbers<[1], [0], [0], [1], [0, 0, 1, 1], [], []>} : vector<8x8xf32>, vector<8x32xf32>, vector<8x32xf32> -> vector<8x32xf32>
    %69 = arith.addf %38, %68 : vector<8x32xf32>
    %c0_52 = arith.constant 0 : index
    %c16 = arith.constant 16 : index
    %70 = vector.load %arg5[%c0_52, %c16] : memref<32x32xf32, #tpu.memory_space<vmem>>, vector<32x8xf32>
    %cst_53 = arith.constant dense<0.000000e+00> : vector<8x8xf32>
    %71 = tpu.matmul %1, %70, %cst_53 {dimension_numbers = #tpu.dot_dimension_numbers<[1], [0], [0], [1], [0, 0, 1, 1], [], []>} : vector<8x32xf32>, vector<32x8xf32>, vector<8x8xf32> -> vector<8x8xf32>
    %c0_54 = arith.constant 0 : index
    %c16_55 = arith.constant 16 : index
    %72 = vector.load %arg9[%c0_54, %c16_55] : memref<1x32xf32, #tpu.memory_space<vmem>>, vector<1x8xf32>
    %73 = vector.broadcast %72 : vector<1x8xf32> to vector<8x8xf32>
    %74 = arith.addf %71, %73 : vector<8x8xf32>
    %c0_56 = arith.constant 0 : index
    %c16_57 = arith.constant 16 : index
    %75 = vector.load %arg6[%c0_56, %c16_57] : memref<32x32xf32, #tpu.memory_space<vmem>>, vector<32x8xf32>
    %cst_58 = arith.constant dense<0.000000e+00> : vector<8x8xf32>
    %76 = tpu.matmul %3, %75, %cst_58 {dimension_numbers = #tpu.dot_dimension_numbers<[1], [0], [0], [1], [0, 0, 1, 1], [], []>} : vector<8x32xf32>, vector<32x8xf32>, vector<8x8xf32> -> vector<8x8xf32>
    %c0_59 = arith.constant 0 : index
    %c16_60 = arith.constant 16 : index
    %77 = vector.load %arg10[%c0_59, %c16_60] : memref<1x32xf32, #tpu.memory_space<vmem>>, vector<1x8xf32>
    %78 = vector.broadcast %77 : vector<1x8xf32> to vector<8x8xf32>
    %79 = arith.addf %76, %78 : vector<8x8xf32>
    %c0_61 = arith.constant 0 : index
    %c16_62 = arith.constant 16 : index
    %80 = vector.load %arg7[%c0_61, %c16_62] : memref<32x32xf32, #tpu.memory_space<vmem>>, vector<32x8xf32>
    %cst_63 = arith.constant dense<0.000000e+00> : vector<8x8xf32>
    %81 = tpu.matmul %5, %80, %cst_63 {dimension_numbers = #tpu.dot_dimension_numbers<[1], [0], [0], [1], [0, 0, 1, 1], [], []>} : vector<8x32xf32>, vector<32x8xf32>, vector<8x8xf32> -> vector<8x8xf32>
    %c0_64 = arith.constant 0 : index
    %c16_65 = arith.constant 16 : index
    %82 = vector.load %arg11[%c0_64, %c16_65] : memref<1x32xf32, #tpu.memory_space<vmem>>, vector<1x8xf32>
    %83 = vector.broadcast %82 : vector<1x8xf32> to vector<8x8xf32>
    %84 = arith.addf %81, %83 : vector<8x8xf32>
    %cst_66 = arith.constant dense<0.000000e+00> : vector<8x8xf32>
    %85 = tpu.matmul %74, %79, %cst_66 {dimension_numbers = #tpu.dot_dimension_numbers<[1], [1], [0], [0], [0, 0, 1, 0], [], []>} : vector<8x8xf32>, vector<8x8xf32>, vector<8x8xf32> -> vector<8x8xf32>
    %cst_67 = arith.constant dense<0xFF800000> : vector<8xf32>
    %86 = vector.multi_reduction <maximumf>, %85, %cst_67 [1] : vector<8x8xf32> to vector<8xf32>
    %87 = vector.shape_cast %86 : vector<8xf32> to vector<8x1xf32>
    %88 = vector.broadcast %87 : vector<8x1xf32> to vector<8x8xf32>
    %89 = arith.subf %85, %88 : vector<8x8xf32>
    %90 = math.exp %89 : vector<8x8xf32>
    %cst_68 = arith.constant dense<0.000000e+00> : vector<8xf32>
    %91 = vector.multi_reduction <add>, %90, %cst_68 [1] : vector<8x8xf32> to vector<8xf32>
    %92 = vector.shape_cast %91 : vector<8xf32> to vector<8x1xf32>
    %93 = tpu.reciprocal %92 : vector<8x1xf32> -> vector<8x1xf32>
    %94 = vector.broadcast %93 : vector<8x1xf32> to vector<8x8xf32>
    %95 = arith.mulf %90, %94 : vector<8x8xf32>
    %96 = arith.addf %65, %95 : vector<8x8xf32>
    %cst_69 = arith.constant dense<0.000000e+00> : vector<8x8xf32>
    %97 = tpu.matmul %95, %84, %cst_69 {dimension_numbers = #tpu.dot_dimension_numbers<[1], [0], [0], [1], [0, 0, 1, 1], [], []>} : vector<8x8xf32>, vector<8x8xf32>, vector<8x8xf32> -> vector<8x8xf32>
    %c16_70 = arith.constant 16 : index
    %c0_71 = arith.constant 0 : index
    %98 = vector.load %arg8[%c16_70, %c0_71] : memref<32x32xf32, #tpu.memory_space<vmem>>, vector<8x32xf32>
    %cst_72 = arith.constant dense<0.000000e+00> : vector<8x32xf32>
    %99 = tpu.matmul %97, %98, %cst_72 {dimension_numbers = #tpu.dot_dimension_numbers<[1], [0], [0], [1], [0, 0, 1, 1], [], []>} : vector<8x8xf32>, vector<8x32xf32>, vector<8x32xf32> -> vector<8x32xf32>
    %100 = arith.addf %69, %99 : vector<8x32xf32>
    %c0_73 = arith.constant 0 : index
    %c24 = arith.constant 24 : index
    %101 = vector.load %arg5[%c0_73, %c24] : memref<32x32xf32, #tpu.memory_space<vmem>>, vector<32x8xf32>
    %cst_74 = arith.constant dense<0.000000e+00> : vector<8x8xf32>
    %102 = tpu.matmul %1, %101, %cst_74 {dimension_numbers = #tpu.dot_dimension_numbers<[1], [0], [0], [1], [0, 0, 1, 1], [], []>} : vector<8x32xf32>, vector<32x8xf32>, vector<8x8xf32> -> vector<8x8xf32>
    %c0_75 = arith.constant 0 : index
    %c24_76 = arith.constant 24 : index
    %103 = vector.load %arg9[%c0_75, %c24_76] : memref<1x32xf32, #tpu.memory_space<vmem>>, vector<1x8xf32>
    %104 = vector.broadcast %103 : vector<1x8xf32> to vector<8x8xf32>
    %105 = arith.addf %102, %104 : vector<8x8xf32>
    %c0_77 = arith.constant 0 : index
    %c24_78 = arith.constant 24 : index
    %106 = vector.load %arg6[%c0_77, %c24_78] : memref<32x32xf32, #tpu.memory_space<vmem>>, vector<32x8xf32>
    %cst_79 = arith.constant dense<0.000000e+00> : vector<8x8xf32>
    %107 = tpu.matmul %3, %106, %cst_79 {dimension_numbers = #tpu.dot_dimension_numbers<[1], [0], [0], [1], [0, 0, 1, 1], [], []>} : vector<8x32xf32>, vector<32x8xf32>, vector<8x8xf32> -> vector<8x8xf32>
    %c0_80 = arith.constant 0 : index
    %c24_81 = arith.constant 24 : index
    %108 = vector.load %arg10[%c0_80, %c24_81] : memref<1x32xf32, #tpu.memory_space<vmem>>, vector<1x8xf32>
    %109 = vector.broadcast %108 : vector<1x8xf32> to vector<8x8xf32>
    %110 = arith.addf %107, %109 : vector<8x8xf32>
    %c0_82 = arith.constant 0 : index
    %c24_83 = arith.constant 24 : index
    %111 = vector.load %arg7[%c0_82, %c24_83] : memref<32x32xf32, #tpu.memory_space<vmem>>, vector<32x8xf32>
    %cst_84 = arith.constant dense<0.000000e+00> : vector<8x8xf32>
    %112 = tpu.matmul %5, %111, %cst_84 {dimension_numbers = #tpu.dot_dimension_numbers<[1], [0], [0], [1], [0, 0, 1, 1], [], []>} : vector<8x32xf32>, vector<32x8xf32>, vector<8x8xf32> -> vector<8x8xf32>
    %c0_85 = arith.constant 0 : index
    %c24_86 = arith.constant 24 : index
    %113 = vector.load %arg11[%c0_85, %c24_86] : memref<1x32xf32, #tpu.memory_space<vmem>>, vector<1x8xf32>
    %114 = vector.broadcast %113 : vector<1x8xf32> to vector<8x8xf32>
    %115 = arith.addf %112, %114 : vector<8x8xf32>
    %cst_87 = arith.constant dense<0.000000e+00> : vector<8x8xf32>
    %116 = tpu.matmul %105, %110, %cst_87 {dimension_numbers = #tpu.dot_dimension_numbers<[1], [1], [0], [0], [0, 0, 1, 0], [], []>} : vector<8x8xf32>, vector<8x8xf32>, vector<8x8xf32> -> vector<8x8xf32>
    %cst_88 = arith.constant dense<0xFF800000> : vector<8xf32>
    %117 = vector.multi_reduction <maximumf>, %116, %cst_88 [1] : vector<8x8xf32> to vector<8xf32>
    %118 = vector.shape_cast %117 : vector<8xf32> to vector<8x1xf32>
    %119 = vector.broadcast %118 : vector<8x1xf32> to vector<8x8xf32>
    %120 = arith.subf %116, %119 : vector<8x8xf32>
    %121 = math.exp %120 : vector<8x8xf32>
    %cst_89 = arith.constant dense<0.000000e+00> : vector<8xf32>
    %122 = vector.multi_reduction <add>, %121, %cst_89 [1] : vector<8x8xf32> to vector<8xf32>
    %123 = vector.shape_cast %122 : vector<8xf32> to vector<8x1xf32>
    %124 = tpu.reciprocal %123 : vector<8x1xf32> -> vector<8x1xf32>
    %125 = vector.broadcast %124 : vector<8x1xf32> to vector<8x8xf32>
    %126 = arith.mulf %121, %125 : vector<8x8xf32>
    %127 = arith.addf %96, %126 : vector<8x8xf32>
    %cst_90 = arith.constant dense<0.000000e+00> : vector<8x8xf32>
    %128 = tpu.matmul %126, %115, %cst_90 {dimension_numbers = #tpu.dot_dimension_numbers<[1], [0], [0], [1], [0, 0, 1, 1], [], []>} : vector<8x8xf32>, vector<8x8xf32>, vector<8x8xf32> -> vector<8x8xf32>
    %c24_91 = arith.constant 24 : index
    %c0_92 = arith.constant 0 : index
    %129 = vector.load %arg8[%c24_91, %c0_92] : memref<32x32xf32, #tpu.memory_space<vmem>>, vector<8x32xf32>
    %cst_93 = arith.constant dense<0.000000e+00> : vector<8x32xf32>
    %130 = tpu.matmul %128, %129, %cst_93 {dimension_numbers = #tpu.dot_dimension_numbers<[1], [0], [0], [1], [0, 0, 1, 1], [], []>} : vector<8x8xf32>, vector<8x32xf32>, vector<8x32xf32> -> vector<8x32xf32>
    %131 = arith.addf %100, %130 : vector<8x32xf32>
    %c0_94 = arith.constant 0 : index
    %c0_95 = arith.constant 0 : index
    %132 = vector.load %arg12[%c0_94, %c0_95] : memref<1x32xf32, #tpu.memory_space<vmem>>, vector<1x32xf32>
    %133 = vector.broadcast %132 : vector<1x32xf32> to vector<8x32xf32>
    %134 = arith.addf %131, %133 : vector<8x32xf32>
    %c0_96 = arith.constant 0 : index
    %c0_97 = arith.constant 0 : index
    %c0_98 = arith.constant 0 : index
    %135 = vector.load %arg13[%c0_96, %c0_97, %c0_98] : memref<1x8x32xf32, #tpu.memory_space<vmem>>, vector<1x8x32xf32>
    %136 = vector.shape_cast %135 : vector<1x8x32xf32> to vector<8x32xf32>
    %137 = vector.shape_cast %134 : vector<8x32xf32> to vector<1x8x32xf32>
    tpu.vector_store %arg13[%c0_96, %c0_97, %c0_98], %137 {strides = array<i32>} : memref<1x8x32xf32, #tpu.memory_space<vmem>>, vector<1x8x32xf32>,
    %cst_99 = arith.constant 2.500000e-01 : f32
    %138 = vector.broadcast %cst_99 : f32 to vector<8x8xf32>
    %139 = arith.mulf %127, %138 : vector<8x8xf32>
    %c0_100 = arith.constant 0 : index
    %c0_101 = arith.constant 0 : index
    %c0_102 = arith.constant 0 : index
    %140 = vector.load %arg14[%c0_100, %c0_101, %c0_102] : memref<1x8x8xf32, #tpu.memory_space<vmem>>, vector<1x8x8xf32>
    %141 = vector.shape_cast %140 : vector<1x8x8xf32> to vector<8x8xf32>
    %142 = vector.shape_cast %139 : vector<8x8xf32> to vector<1x8x8xf32>
    tpu.vector_store %arg14[%c0_100, %c0_101, %c0_102], %142 {strides = array<i32>} : memref<1x8x8xf32, #tpu.memory_space<vmem>>, vector<1x8x8xf32>,
    return
  }
  func.func @transform_0(%arg0: i32, %arg1: i32) -> (i32, i32, i32) {
    %c0_i32 = arith.constant 0 : i32
    %c0_i32_0 = arith.constant 0 : i32
    return %arg0, %arg1, %c0_i32 : i32, i32, i32
  }
  func.func @transform_1(%arg0: i32, %arg1: i32) -> (i32, i32, i32) {
    %c0_i32 = arith.constant 0 : i32
    %c0_i32_0 = arith.constant 0 : i32
    %c0_i32_1 = arith.constant 0 : i32
    return %arg0, %c0_i32, %c0_i32_0 : i32, i32, i32
  }
  func.func @transform_2(%arg0: i32, %arg1: i32) -> (i32, i32, i32) {
    %c0_i32 = arith.constant 0 : i32
    %c0_i32_0 = arith.constant 0 : i32
    %c0_i32_1 = arith.constant 0 : i32
    return %arg0, %c0_i32, %c0_i32_0 : i32, i32, i32
  }
  func.func @transform_3(%arg0: i32, %arg1: i32) -> (i32, i32) {
    %c0_i32 = arith.constant 0 : i32
    %c0_i32_0 = arith.constant 0 : i32
    %c0_i32_1 = arith.constant 0 : i32
    return %c0_i32, %c0_i32_0 : i32, i32
  }
  func.func @transform_4(%arg0: i32, %arg1: i32) -> (i32, i32) {
    %c0_i32 = arith.constant 0 : i32
    %c0_i32_0 = arith.constant 0 : i32
    %c0_i32_1 = arith.constant 0 : i32
    return %c0_i32, %c0_i32_0 : i32, i32
  }
  func.func @transform_5(%arg0: i32, %arg1: i32) -> (i32, i32) {
    %c0_i32 = arith.constant 0 : i32
    %c0_i32_0 = arith.constant 0 : i32
    %c0_i32_1 = arith.constant 0 : i32
    return %c0_i32, %c0_i32_0 : i32, i32
  }
  func.func @transform_6(%arg0: i32, %arg1: i32) -> (i32, i32) {
    %c0_i32 = arith.constant 0 : i32
    %c0_i32_0 = arith.constant 0 : i32
    %c0_i32_1 = arith.constant 0 : i32
    return %c0_i32, %c0_i32_0 : i32, i32
  }
  func.func @transform_7(%arg0: i32, %arg1: i32) -> (i32, i32) {
    %c0_i32 = arith.constant 0 : i32
    %c0_i32_0 = arith.constant 0 : i32
    %c0_i32_1 = arith.constant 0 : i32
    return %c0_i32, %c0_i32_0 : i32, i32
  }
  func.func @transform_8(%arg0: i32, %arg1: i32) -> (i32, i32) {
    %c0_i32 = arith.constant 0 : i32
    %c0_i32_0 = arith.constant 0 : i32
    %c0_i32_1 = arith.constant 0 : i32
    return %c0_i32, %c0_i32_0 : i32, i32
  }
  func.func @transform_9(%arg0: i32, %arg1: i32) -> (i32, i32) {
    %c0_i32 = arith.constant 0 : i32
    %c0_i32_0 = arith.constant 0 : i32
    %c0_i32_1 = arith.constant 0 : i32
    return %c0_i32, %c0_i32_0 : i32, i32
  }
  func.func @transform_10(%arg0: i32, %arg1: i32) -> (i32, i32) {
    %c0_i32 = arith.constant 0 : i32
    %c0_i32_0 = arith.constant 0 : i32
    %c0_i32_1 = arith.constant 0 : i32
    return %c0_i32, %c0_i32_0 : i32, i32
  }
  func.func @transform_11(%arg0: i32, %arg1: i32) -> (i32, i32, i32) {
    %c0_i32 = arith.constant 0 : i32
    %c0_i32_0 = arith.constant 0 : i32
    return %arg0, %arg1, %c0_i32 : i32, i32, i32
  }
  func.func @transform_12(%arg0: i32, %arg1: i32) -> (i32, i32, i32) {
    %c0_i32 = arith.constant 0 : i32
    %c0_i32_0 = arith.constant 0 : i32
    return %arg0, %arg1, %c0_i32 : i32, i32, i32
  }
}

</mosaic_0001>

<bundles_post_ra>
// kernel: tpu_custom_call.1
= control target key start
LH: loop header
LB: loop body
LE: loop exit
PB: predicated region body
PF: predicated region fallthrough
CT: control target
= control target key end

     0   :  { %s2799_s0 = inlined_call_operand.hbm [shape: f32[2,8,32], index: 0, kind: input, shape index: {}]   ;;  %s2800_s1 = inlined_call_operand.hbm [shape: f32[2,8,32], index: 1, kind: input, shape index: {}]   ;;  %s2801_s2 = inlined_call_operand.hbm [shape: f32[2,8,32], index: 2, kind: input, shape index: {}]   ;;  %s2802_s3 = inlined_call_operand.hbm [shape: f32[32,32], index: 3, kind: input, shape index: {}]   ;;  %s2803_s4 = inlined_call_operand.hbm [shape: f32[32,32], index: 4, kind: input, shape index: {}]   ;;  %s2804_s5 = inlined_call_operand.hbm [shape: f32[32,32], index: 5, kind: input, shape index: {}]   ;;  %s2805_s6 = inlined_call_operand.hbm [shape: f32[32,32], index: 6, kind: input, shape index: {}]   ;;  %s2806_s7 = inlined_call_operand.vmem [shape: f32[1,32], index: 7, kind: input, shape index: {}]   ;;  %s2807_s8 = inlined_call_operand.vmem [shape: f32[1,32], index: 8, kind: input, shape index: {}]   ;;  %s2808_s9 = inlined_call_operand.vmem [shape: f32[1,32], index: 9, kind: input, shape index: {}]   ;;  %s2809_s10 = inlined_call_operand.vmem [shape: f32[1,32], index: 10, kind: input, shape index: {}]   ;;  %s2810_s11 = inlined_call_operand.hbm [shape: f32[2,8,32], index: 11, kind: output, shape index: {0}]   ;;  %s2811_s12 = inlined_call_operand.hbm [shape: f32[2,8,8], index: 12, kind: output, shape index: {1}]  }
   0x1   :  { %2825 = sst [smem:[#allocation29_spill]] %s2799_s0 }
   0x2   :  { %2826 = sst [smem:[#allocation30_spill]] %s2800_s1 }
   0x3   :  { %2827 = sst [smem:[#allocation31_spill]] %s2802_s3 }
   0x4   :  { %2828 = sst [smem:[#allocation32_spill]] %s2803_s4 }
   0x5   :  { %2829 = sst [smem:[#allocation33_spill]] %s2804_s5 }
   0x6   :  { %2830 = sst [smem:[#allocation34_spill]] %s2805_s6 }
   0x7   :  { %2831 = sst [smem:[#allocation35_spill]] %s2809_s10 }
   0x8   :  { %2832 = sst [smem:[#allocation36_spill]] %s2810_s11 }
   0x9   :  { %2833 = sst [smem:[#allocation37_spill]] %s2811_s12 }
   0xa   :  { %18 = vsyncpa [#allocation3], 0 }
   0xb   :  { %20 = vsyncpa [#allocation3 + $0x1], 0 }
   0xc   :  { %21 = vsyncpa [#allocation6], 0 }
   0xd   :  { %23 = vsyncpa [#allocation6 + $0x1], 0 }
   0xe   :  { %24 = vsyncpa [#allocation9], 0 }
   0xf   :  { %25 = vsyncpa [#allocation12], 0 }
  0x10   :  { %26 = vsyncpa [#allocation4], 0 }
  0x11   :  { %28 = vsyncpa [#allocation4 + $0x1], 0 }
  0x12   :  { %29 = vsyncpa [#allocation16], 0 }
  0x13   :  { %31 = vsyncpa [#allocation16 + $0x1], 0  ;;  %s2364_s21 = smov 0   ;;  %s2366_s22 = smov 0  }
  0x14   :  { %s2368_s23 = smov 0   ;;  %s2370_s24 = smov 0  }
  0x15   :  { %s2372_s25 = smov 0   ;;  %s2374_s26 = smov 0  }
  0x16 LB: > { %2834 = sst [smem:[#allocation23_spill]] %s2268_s21  ;;  %s2395_s27 = sadd.s32 4294967295, %s2288_s26   ;;  %s2288_s26 = sphi %s2374_s26, %s37_s26   ;;  %s2284_s25 = sphi %s2372_s25, %s2864_s25   ;;  %s2280_s24 = sphi %s2370_s24, %s2863_s24   ;;  %s2276_s23 = sphi %s2368_s23, %s2867_s23   ;;  %s2272_s22 = sphi %s2366_s22, %s2866_s22   ;;  %s2268_s21 = sphi %s2364_s21, %s2865_s21  }
  0x17   : > { %2835 = sst [smem:[#allocation24_spill]] %s2284_s25  ;;  %p1663_p0 = scmp.ge.s32.totalorder %s2288_s26, 1 }
  0x18   : > { %2836 = sst [smem:[#allocation25_spill]] %s2288_s26  ;;  %p72_p1 = scmp.eq.s32.totalorder %s2395_s27, 0 }
  0x19   : > { %p358_p2 = scmp.lt.s32.totalorder %s2288_s26, 3  ;;  %s2837_s3 = sld [smem:[#allocation31_spill]] }
  0x1a   : > { %s2290_s14 = smov [#allocation8]   ;;  %p1668_p6 = scmp.ge.s32.totalorder %s2288_s26, 2 }
  0x1b   : > { %p2403_p3 = pnand %p1663_p0, %p358_p2  ;;  %s371_s15 = sshll.u32 %s2290_s14, 4  ;;  %s372_s15 = int_to_ptr.vmem [resolvable:$true] %s371_s15 }
  0x1c   : > { %s2840_s5 = sld [smem:[#allocation33_spill]]  ;;  %s2812_s20 = smov 128  }
  0x1d   : > { %p1745_p4 = pneg %p2403_p3  ;;  %s2814_s28 = smov 8  }
  0x1e   : > { %s2293_s29 = smov [#allocation11]   ;;  %s1662_s17 = sadd.s32 4294967294, %s2288_s26  }
  0x1f   : > { %s369_s30 = sshll.u32 %s2837_s3, 4  ;;  %p2411_p5 = pnand %p1745_p4, %p72_p1  ;;  %s370_s30 = int_to_ptr.hbm [resolvable:$true] %s369_s30 }
  0x20   : > { %s399_s14 = sshll.u32 %s2293_s29, 4  ;;  %s49_s18 = sadd.s32 1, %s2284_s25  ;;  %s400_s14 = int_to_ptr.vmem [resolvable:$true] %s399_s14 }
  0x21   : > { %1748 = dma.hbm_to_vmem [thread:$0]  (!%p2411_p5), %s370_s30, 512, %s372_s15, [#allocation9], %s2812_s20, %s2812_s20, %s2814_s28  }
  0x22   : > { %s397_s19 = sshll.u32 %s2840_s5, 4  ;;  %p51_p7 = scmp.ge.s32.totalorder %s49_s18, 2  ;;  %s398_s19 = int_to_ptr.hbm [resolvable:$true] %s397_s19 }
  0x23   : > { %1754 = dma.hbm_to_vmem [thread:$0]  (!%p2411_p5), %s398_s19, 512, %s400_s14, [#allocation12], %s2812_s20, %s2812_s20, %s2814_s28  }
  0x24   : > { %s58_s3 = sadd.s32 1, %s2276_s23  ;;  %p65_p8 = scmp.ne.s32.totalorder %s2276_s23, %s2272_s22 }
  0x25   : > { %p66_p9 = scmp.eq.s32.totalorder %s2288_s26, 0  ;;  %s2869_s18 = smov (%p51_p7, %s49_s18), 0 }
  0x26   : > { %2841 = sst [smem:[#allocation26_spill]] %s2869_s18  ;;  %p71_p11 = scmp.ne.s32.totalorder %s2272_s22, %s2268_s21 }
  0x27   : > { %p2437_p10 = por %p66_p9, %p65_p8  ;;  %s53_s15 = ssub.s32 %s2284_s25, %s2869_s18 }
  0x28   : > { %p317_p12 = scmp.eq.s32.totalorder %s2395_s27, 1  ;;  %p56_p13 = scmp.eq.s32.totalorder %s53_s15, 0 }
  0x29   : > { %p2448_p0 = por %p72_p1, %p71_p11  ;;  %p323_p4 = scmp.eq.s32.totalorder %s1662_s17, 1 }
  0x2a   : > { %p2452_p2 = por %p317_p12, %p65_p8  ;;  %p1779_p9 = scmp.lt.s32.totalorder %s2288_s26, 2 }
  0x2b   : > { %s2457_s14 = scalar_select %p56_p13, %s2276_s23, %s58_s3  }
  0x2c   : > { %p2459_p7 = por %p323_p4, %p71_p11  ;;  %s2820_s28 = sand.u32 1, %s2276_s23  }
  0x2d   : > { %2845 = sst [smem:[#allocation27_spill]] %s2457_s14  ;;  %s2466_s5 = sshll.u32 %s2284_s25, 3 }
  0x2e   : > { %s2846_s20 = scalar_select %p2459_p7, 1, 0 }
  0x2f   : > { %s2470_s15 = sshll.u32 %s2820_s28, 3  ;;  %p2474_p8 = pnand %p1779_p9, %p2437_p10 }
  0x30   : > { %2847 = sst [smem:[#allocation28_spill]] %s2846_s20  ;;  %s459_s3 = sand.u32 1, %s2288_s26  }
  0x31   : > { %s2849_s1 = sld [smem:[#allocation30_spill]]  ;;  %s463_s21 = scalar_lea.vmem [#allocation5], %s2470_s15 }
  0x32   : > { %s471_s25 = sshll.u32 %s463_s21, 4  ;;  %s2850_s4 = sld [smem:[#allocation32_spill]]  ;;  %s472_s25 = int_to_ptr.vmem [resolvable:$true] %s471_s25 }
  0x33   : > { %s460_s12 = scalar_lea.sflag [#allocation6], %s459_s3  ;;  %s2294_s26 = smov [#allocation10]  }
  0x34   : > { %s385_s14 = sshll.u32 %s2294_s26, 4  ;;  %s2851_s6 = sld [smem:[#allocation34_spill]]  ;;  %s386_s14 = int_to_ptr.vmem [resolvable:$true] %s385_s14 }
  0x35   : > { %s2853_s28 = smov 128   ;;  %s2295_s3 = smov [#allocation13]  }
  0x36   : > { %s2854_s0 = sld [smem:[#allocation29_spill]]  ;;  %s443_s17 = scalar_lea.vmem [#allocation2], %s2470_s15 }
  0x37   : > { %s467_s20 = scalar_lea.hbm %s2849_s1, %s2466_s5 }
  0x38   : > { %s469_s10 = sshll.u32 %s467_s20, 4  ;;  %s383_s11 = sshll.u32 %s2850_s4, 4  ;;  %s470_s10 = int_to_ptr.hbm [resolvable:$true] %s469_s10  ;;  %s384_s11 = int_to_ptr.hbm [resolvable:$true] %s383_s11 }
  0x39   : > { %1764 = dma.hbm_to_vmem [thread:$0]  (!%p2474_p8), %s470_s10, 128, %s472_s25, %s460_s12  }
  0x3a   : > { %s411_s21 = sshll.u32 %s2851_s6, 4  ;;  %s2852_s20 = smov 8   ;;  %s412_s21 = int_to_ptr.hbm [resolvable:$true] %s411_s21 }
  0x3b   : > { %1751 = dma.hbm_to_vmem [thread:$0]  (!%p2411_p5), %s384_s11, 512, %s386_s14, [#allocation9], %s2853_s28, %s2853_s28, %s2852_s20  }
  0x3c   : > { %s413_s10 = sshll.u32 %s2295_s3, 4  ;;  %s448_s26 = scalar_lea.hbm %s2854_s0, %s2466_s5  ;;  %s414_s10 = int_to_ptr.vmem [resolvable:$true] %s413_s10 }
  0x3d   : > { %1757 = dma.hbm_to_vmem [thread:$0]  (!%p2411_p5), %s412_s21, 512, %s414_s10, [#allocation12], %s2853_s28, %s2853_s28, %s2852_s20  }
  0x3e   : > { %s450_s1 = sshll.u32 %s448_s26, 4  ;;  %s452_s4 = sshll.u32 %s443_s17, 4  ;;  %s451_s1 = int_to_ptr.hbm [resolvable:$true] %s450_s1  ;;  %s453_s4 = int_to_ptr.vmem [resolvable:$true] %s452_s4 }
  0x3f   : > { %s2855_s6 = sand.u32 1, %s2276_s23   ;;  %s486_s25 = scalar_lea.hbm %s2801_s2, %s2466_s5 }
  0x40   : > { %s440_s11 = scalar_lea.sflag [#allocation3], %s2855_s6  ;;  %s488_s30 = sshll.u32 %s486_s25, 4  ;;  %s489_s30 = int_to_ptr.hbm [resolvable:$true] %s488_s30 }
  0x41   : > { %1761 = dma.hbm_to_vmem [thread:$0]  (!%p2474_p8), %s451_s1, 128, %s453_s4, %s440_s11  }
  0x42   : > { %s482_s0 = scalar_lea.vmem [#allocation7], %s2470_s15  ;;  %499 = sbr.rel (%p2403_p3) target bundleno = 2348 (0x92c), region = 64 }
  0x43   : > { %s490_s16 = sshll.u32 %s482_s0, 4  ;;  %s2521_s21 = sand.u32 (!%p2403_p3), 1, %s2272_s22   ;;  %s491_s16 = int_to_ptr.vmem [resolvable:$true] %s490_s16 }
  0x44   : > { %1767 = dma.hbm_to_vmem [thread:$0]  (!%p2474_p8), %s489_s30, 128, %s491_s16, %s460_s12  }
  0x45   : > { %s2524_s4 = sshll.u32 (!%p2403_p3), %s2521_s21, 3  ;;  %s502_s5 = scalar_lea.sflag (!%p2403_p3), [#allocation3], %s2521_s21 }
  0x46   : > { %s505_s6 = scalar_lea.vmem (!%p2403_p3), [#allocation2], %s2524_s4 }
  0x47   : > { %2243 = dma.done.wait (%p2448_p0), %s502_s5, 128  }
  0x48   : > { %2245 = vsyncadd (%p2448_p0), %s502_s5, 4294967168  ;;  %s511_s0 = sand.u32 1, %s2395_s27   ;;  %s515_s13 = scalar_lea.vmem [#allocation5], %s2524_s4 }
  0x49   : > { %s512_s12 = scalar_lea.sflag [#allocation6], %s511_s0 }
  0x4a   : > { %2247 = dma.done.wait (%p2448_p0), %s512_s12, 256  }
  0x4b   : > { %2249 = vsyncadd (%p2448_p0), %s512_s12, 4294967040  ;;  %s525_s18 = scalar_lea.vmem [#allocation7], %s2524_s4 }
  0x4c   : > { %2251 = dma.done.wait (%p72_p1), [#allocation9], 1024  }
  0x4d   : > { %2253 = vsyncadd (%p72_p1), [#allocation9], 4294966272 }
  0x4e   : > { %2255 = dma.done.wait (%p72_p1), [#allocation12], 1024  }
  0x4f   : > { %2257 = vsyncadd (%p72_p1), [#allocation12], 4294966272  ;;  %v2547_v0 = vld [vmem:[#allocation10 + $0x18] sm:$0xff]  ;;  %v2549_v1 = vld [vmem:[#allocation10 + $0x10] sm:$0xff]  ;;  %vm613_vm0 = vcmask 261120   ;;  %vm699_vm1 = vcmask 64512  }
  0x50   : > { %v2551_v2 = vld [vmem:[#allocation8 + $0x18] sm:$0xff]  ;;  %660 = vmatpush.msra.mxu1 %v2547_v0  ;;  %v2555_v3 = vld [vmem:[#allocation8 + $0x10] sm:$0xff]  ;;  %v2557_v4 = vld [vmem:[#allocation10 + $0x8] sm:$0xff]  ;;  %v2595_v16 = vpack.i.bf16 %v2549_v1, %v2547_v0  ;;  %s2296_s28 = smov 120   ;;  %s2297_s1 = smov 112  }
  0x51   : > { %629 = vmatpush.msra.mxu0 %v2551_v2  ;;  %v2559_v5 = vld [vmem:[#allocation8 + $0x8] sm:$0xff]  ;;  %v2563_v6 = vld [vmem:[#allocation10] sm:$0xff]  ;;  %v2571_v9 = vld [vmem:[%s505_s6] sm:$0xff]  ;;  %v1847_v18 = vpack.i.bf16 %v2557_v4, %v2551_v2  ;;  %s2298_s17 = smov 104   ;;  %s601_s11 = scalar_lea.vmem [#allocation15], %s2524_s4 }
  0x52   : > { %661 = vmatpush.msra.mxu1 %v2549_v1  ;;  %v2565_v7 = vld [vmem:[#allocation8] sm:$0xff]  ;;  %v2582_v10 = vld [vmem:[%s2807_s8] ss:$0 sm:$0xff]  ;;  %v1852_v17 = vpack.i.bf16 %v2563_v6, %v2555_v3  ;;  %1843 = vrot.lane.b32.xlu0 %v2595_v16, %s2296_s28  ;;  %v671_v23 = vld [vmem:[#allocation11 + $0x18] sm:$0xff]  ;;  %s1715_s14 = sshll.u32 %s2280_s24, 3  ;;  %s2856_s30 = sld [smem:[#allocation37_spill]] }
  0x53   : > { %630 = vmatpush.msra.mxu0 %v2555_v3  ;;  %v2569_v8 = vld [vmem:[%s515_s13] sm:$0xff]  ;;  %v2587_v11 = vld [vmem:[%s2806_s7] ss:$0 sm:$0xff]  ;;  %v2606_v19 = vpack.i.bf16 %v2565_v7, %v2559_v5  ;;  %691 = vmatpush.msra.mxu2 %v671_v23  ;;  %s1463_s5 = sshll.u32 %s601_s11, 4  ;;  %s1435_s0 = scalar_lea.sflag [#allocation16], %s2521_s21  ;;  %s1464_s5 = int_to_ptr.vmem [resolvable:$true] %s1463_s5 }
  0x54   : > { %662 = vmatpush.msra.mxu1 %v2557_v4  ;;  %1853 = vrot.lane.b32.xlu1 %v1852_v17, %s2296_s28  ;;  %v670_v24 = vld [vmem:[#allocation11 + $0x10] sm:$0xff]  ;;  %v669_v28 = vld [vmem:[#allocation11 + $0x8] sm:$0xff]  ;;  %v668_v29 = vld [vmem:[#allocation11] sm:$0xff] }
  0x55   : > { %631 = vmatpush.msra.mxu0 %v2559_v5  ;;  %692 = vmatpush.msra.mxu2 %v670_v24  ;;  %v2618_v30 = vld [vmem:[%s525_s18] sm:$0xff]  ;;  %v2633_v49 = vpack.i.bf16 %v668_v29, %v669_v28  ;;  %v2638_v51 = vpack.i.bf16 %v670_v24, %v671_v23  ;;  %v774_v23 = vld [vmem:[#allocation13] sm:$0xff] }
  0x56   : > { %663 = vmatpush.msra.mxu1 %v2563_v6  ;;  %v2630_v44 = vld [vmem:[%s2808_s9] ss:$0 sm:$0xff] }
  0x57   : > { %632 = vmatpush.msra.mxu0 %v2565_v7  ;;  %1686 = vmatmul.msk.f32.vlgmr.msra.gmra.mxu1 %vm613_vm0, %v2569_v8 }
  0x58   : > { %1685 = vmatmul.msk.f32.vlgmr.msra.gmra.mxu0 %vm613_vm0, %v2571_v9  ;;  %693 = vmatpush.msra.mxu2 %v669_v28  ;;  %v2655_v28 = vpack.i.bf16 %v2563_v6, %v2557_v4  ;;  %v1882_v4 = vpack.i.bf16 %v2565_v7, %v2549_v1  ;;  %s1461_s16 = scalar_lea.hbm %s2856_s30, %s1715_s14  ;;  %s2182_s24 = scalar_lea.hbm %s2856_s30, 16 }
  0x59   : > { %s1465_s6 = sshll.u32 %s1461_s16, 4  ;;  %s1466_s6 = int_to_ptr.hbm [resolvable:$true] %s1465_s6 }
  0x5a   : > { %1848 = vrot.lane.b32.xlu0 %v1847_v18, %s2296_s28  ;;  %694 = vmatpush.msra.mxu2 %v668_v29  ;;  %v2659_v29 = vpack.i.bf16 %v2555_v3, %v2551_v2  ;;  %s2176_s12 = sshra.s32 %s1466_s6, 4  ;;  %s2177_s12 = int_to_ptr.hbm [resolvable:$true] %s2176_s12 }
  0x5b   : > { %1687 = vmatmul.msk.f32.vlgmr.msra.gmra.mxu2 %vm613_vm0, %v2618_v30  ;;  %s2178_s13 = scalar_lea.hbm %s2177_s12, 8  ;;  %p2183_p10 = scmp.lt.s32.totalorder %s2177_s12, %s2856_s30 }
  0x5c   : > { %1858 = vrot.lane.b32.xlu1 %v2606_v19, %s2296_s28  ;;  %p2179_p1 = scmp.ne.s32.totalorder %s2177_s12, %s2178_s13  ;;  %p2184_p11 = scmp.lt.s32.totalorder %s2182_s24, %s2178_s13 }
  0x5e   : > { %p2180_p3 = pnand %p2179_p1, %p2452_p2  ;;  %p2185_p12 = por %p2184_p11, %p2183_p10 }
  0x60   : > { %p2181_p5 = pneg %p2180_p3 }
  0x62   : > { %830 = vrot.lane.b32.xlu0 %v2582_v10, %s2296_s28  ;;  %p2186_p13 = pnand %p2185_p12, %p2181_p5 }
  0x64   : > { %791 = vrot.lane.b32.xlu1 %v2587_v11, %s2296_s28 }
  0x6a   : > { %1868 = vrot.lane.b32.xlu0 %v2633_v49, %s2296_s28 }
  0xc4   : > { %v1844_v22 = vpop.permute.xlu0 %1843 }
  0xc5   : > { %v1845_v25 = vunpack.i.l.bf16 %v1844_v22  ;;  %v1846_v27 = vunpack.i.h.bf16 %v1844_v22 }
  0xc6   : > { %v1854_v26 = vpop.permute.xlu1 %1853 }
  0xc7   : > { %845 = vmatpush.msrb.mxu1 %v1845_v25  ;;  %v1855_v34 = vunpack.i.l.bf16 %v1854_v26  ;;  %v1856_v35 = vunpack.i.h.bf16 %v1854_v26 }
  0xc9   : > { %846 = vmatpush.msrb.mxu1 %v1846_v27 }
  0xcc   : > { %v1849_v31 = vpop.permute.xlu0 %1848 }
  0xcd   : > { %v1850_v32 = vunpack.i.l.bf16 %v1849_v31  ;;  %v1851_v33 = vunpack.i.h.bf16 %v1849_v31 }
  0xce   : > { %v1859_v36 = vpop.permute.xlu1 %1858 }
  0xcf   : > { %806 = vmatpush.msrb.mxu0 %v1850_v32  ;;  %847 = vmatpush.msrb.mxu1 %v1851_v33  ;;  %v1860_v37 = vunpack.i.l.bf16 %v1859_v36  ;;  %v1861_v38 = vunpack.i.h.bf16 %v1859_v36  ;;  %v1877_v33 = vpack.i.bf16 %v2559_v5, %v2547_v0 }
  0xd1   : > { %807 = vmatpush.msrb.mxu0 %v1855_v34  ;;  %848 = vmatpush.msrb.mxu1 %v1856_v35 }
  0xd2   : > { %1692 = vmatmul.msk.f32.vlgmr.msrb.gmra.mxu1 %vm613_vm0, %v2569_v8 }
  0xd3   : > { %808 = vmatpush.msrb.mxu0 %v1860_v37 }
  0xd4   : > { %v665_v12 = vpop.f32.mrf.mxu1  ;;  %v831_v47 = vpop.permute.xlu0 %830 }
  0xd5   : > { %v634_v13 = vpop.f32.mrf.mxu0  ;;  %v666_v14 = vadd.f32 %v2582_v10, %v665_v12  ;;  %809 = vmatpush.msrb.mxu0 %v1861_v38 }
  0xd6   : > { %v635_v15 = vadd.f32 %v2587_v11, %v634_v13  ;;  %1691 = vmatmul.msk.f32.vlgmr.msrb.gmra.mxu0 %vm613_vm0, %v2571_v9  ;;  %v792_v12 = vpop.permute.xlu1 %791 }
  0xd7   : > { %1688 = vmatpush.xpose.msk.msra.mxu3 %vm699_vm1, %v666_v14 }
  0xda   : > { %1689 = vmatmul.msk.f32.vlgmr.msra.gmra.mxu3 %vm699_vm1, %v635_v15 }
  0xde   : > { %v696_v45 = vpop.f32.mrf.mxu2 }
  0xdf   : > { %v697_v46 = vadd.f32 %v2630_v44, %v696_v45 }
  0xe1   : > { %769 = vmatpush.msrb.mxu3 %v697_v46 }
 0x14f   : > { %v850_v48 = vpop.f32.mrf.mxu1 }
 0x150   : > { %v851_v50 = vadd.f32 %v850_v48, %v831_v47 }
 0x152   : > { %1694 = vmatpush.xpose.msk.msra.mxu3 %vm699_vm1, %v851_v50 }
 0x153   : > { %v811_v13 = vpop.f32.mrf.mxu0 }
 0x154   : > { %v812_v14 = vadd.f32 %v811_v13, %v792_v12 }
 0x15d   : > { %v723_v20 = vpop.f32.mrf.mxu3 }
 0x15e   : > { %v726_v21 = vsel %vm699_vm1, %v723_v20, -inf }
 0x15f   : > { %727 = vmax.xlane.f32.xlu2 %v726_v21 }
 0x1d2   : > { %v728_v39 = vpop.xlane.xlu2 %727 }
 0x1d3   : > { %v729_v40 = vsub.f32 %v723_v20, %v728_v39  ;;  %v1869_v20 = vpop.permute.xlu0 %1868 }
 0x1d4   : > { %v1870_v21 = vunpack.i.l.bf16 %v1869_v20  ;;  %v1871_v22 = vunpack.i.h.bf16 %v1869_v20 }
 0x1d5   : > { %v730_v41 = vmul.f32 1.442695, %v729_v40 }
 0x1d7   : > { %1936 = vpow2.f32 %v730_v41 }
 0x1dd   : > { %v1937_v42 = vpop.eup %1936 }
 0x1de   : > { %v732_v43 = vsel %vm699_vm1, %v1937_v42, 0.0 }
 0x1df   : > { %733 = vadd.xlane.f32.xlu2 %v732_v43 }
 0x1f7   : > { %1863 = vrot.lane.b32.xlu2 %v2638_v51, %s2296_s28 }
 0x1ff   : > { %869 = vrot.lane.b32.xlu2 %v2630_v44, %s2296_s28 }
 0x207   : > { %1873 = vrot.lane.b32.xlu2 %v2659_v29, %s2297_s1 }
 0x20f   : > { %1878 = vrot.lane.b32.xlu2 %v1877_v33, %s2297_s1 }
 0x217   : > { %1883 = vrot.lane.b32.xlu2 %v1882_v4, %s2297_s1 }
 0x21f   : > { %1060 = vrot.lane.b32.xlu2 %v2582_v10, %s2297_s1 }
 0x227   : > { %1893 = vrot.lane.b32.xlu2 %v2638_v51, %s2297_s1 }
 0x22f   : > { %1898 = vrot.lane.b32.xlu2 %v2633_v49, %s2297_s1 }
 0x237   : > { %1903 = vrot.lane.b32.xlu2 %v2595_v16, %s2298_s17 }
 0x23f   : > { %1095 = vrot.lane.b32.xlu2 %v2630_v44, %s2297_s1 }
 0x247   : > { %1908 = vrot.lane.b32.xlu2 %v2655_v28, %s2298_s17 }
 0x24f   : > { %1913 = vrot.lane.b32.xlu2 %v2659_v29, %s2298_s17 }
 0x252   : > { %v734_v52 = vpop.xlane.xlu2 %733 }
 0x253   : > { %1938 = vrcp.f32 %v734_v52  ;;  %v746_v56 = vand.u32 2147483648, %v734_v52  ;;  %v744_v58 = vand.u32 2147483647, %v734_v52  ;;  %vm740_vm3 = vweird.f32 %v734_v52 }
 0x255   : > { %v747_v60 = vor.u32 1.1754944e-38, %v746_v56  ;;  %vm745_vm5 = vcmp.eq.f32.partialorder %v744_v58, 8.507059e+37 }
 0x257   : > { %1918 = vrot.lane.b32.xlu2 %v2606_v19, %s2298_s17 }
 0x259   : > { %v1939_v53 = vpop.eup %1938 }
 0x25a   : > { %v736_v54 = vmul.f32 %v1939_v53, %v734_v52  ;;  %vm741_vm2 = vweird.f32 %v1939_v53  ;;  %v1864_v15 = vpop.permute.xlu2 %1863 }
 0x25b   : > { %vm742_vm4 = vmor %vm740_vm3, %vm741_vm2  ;;  %v1865_v17 = vunpack.i.l.bf16 %v1864_v15  ;;  %v1866_v18 = vunpack.i.h.bf16 %v1864_v15 }
 0x25c   : > { %v737_v55 = vsub.f32 1.0, %v736_v54 }
 0x25d   : > { %884 = vmatpush.msrb.mxu2 %v1865_v17 }
 0x25e   : > { %v738_v57 = vmul.f32 %v1939_v53, %v737_v55 }
 0x25f   : > { %885 = vmatpush.msrb.mxu2 %v1866_v18  ;;  %1923 = vrot.lane.b32.xlu2 %v2638_v51, %s2298_s17 }
 0x260   : > { %v739_v59 = vadd.f32 %v1939_v53, %v738_v57 }
 0x261   : > { %886 = vmatpush.msrb.mxu2 %v1870_v21 }
 0x262   : > { %v743_v61 = vsel %vm742_vm4, %v1939_v53, %v739_v59  ;;  %v870_v31 = vpop.permute.xlu2 %869  ;;  %v966_v59 = vld [vmem:[#allocation13 + $0x8] sm:$0xff] }
 0x263   : > { %v748_v62 = vsel %vm745_vm5, %v747_v60, %v743_v61  ;;  %887 = vmatpush.msrb.mxu2 %v1871_v22  ;;  %985 = vmatpush.msra.mxu1 %v966_v59 }
 0x264   : > { %v2644_v63 = vmul.f32 %v1937_v42, %v748_v62  ;;  %1693 = vmatmul.msk.f32.vlgmr.msrb.gmra.mxu2 %vm613_vm0, %v2618_v30 }
 0x265   : > { %1008 = vmatpush.msra.mxu2 %v774_v23 }
 0x266   : > { %1690 = vmatmul.msk.f32.vlgmr.msrb.gmra.mxu3 %vm699_vm1, %v2644_v63 }
 0x267   : > { %1928 = vrot.lane.b32.xlu2 %v2633_v49, %s2298_s17 }
 0x26a   : > { %v1874_v0 = vpop.permute.xlu2 %1873 }
 0x26b   : > { %v1875_v5 = vunpack.i.l.bf16 %v1874_v0  ;;  %v1876_v36 = vunpack.i.h.bf16 %v1874_v0 }
 0x26d   : > { %1040 = vmatpush.msrb.mxu3 %v1875_v5  ;;  %v1192_v5 = vld [vmem:[#allocation13 + $0x10] sm:$0xff] }
 0x26e   : > { %1695 = vmatmul.msk.f32.vlgmr.msra.gmra.mxu3 %vm699_vm1, %v812_v14 }
 0x26f   : > { %1041 = vmatpush.msrb.mxu3 %v1876_v36 }
 0x272   : > { %v1879_v1 = vpop.permute.xlu2 %1878 }
 0x273   : > { %v1881_v7 = vunpack.i.h.bf16 %v1879_v1  ;;  %v1880_v37 = vunpack.i.l.bf16 %v1879_v1 }
 0x275   : > { %1042 = vmatpush.msrb.mxu3 %v1881_v7 }
 0x27a   : > { %v1884_v39 = vpop.permute.xlu2 %1883 }
 0x27b   : > { %v1886_v40 = vunpack.i.h.bf16 %v1884_v39  ;;  %v1885_v41 = vunpack.i.l.bf16 %v1884_v39 }
 0x27d   : > { %1043 = vmatpush.msrb.mxu3 %v1886_v40 }
 0x27e   : > { %1699 = vmatmul.msk.f32.vlgmr.msrb.gmra.mxu3 %vm613_vm0, %v2571_v9 }
 0x282   : > { %v1061_v61 = vpop.permute.xlu2 %1060 }
 0x28a   : > { %v1894_v21 = vpop.permute.xlu2 %1893 }
 0x28b   : > { %v1896_v22 = vunpack.i.h.bf16 %v1894_v21  ;;  %v1895_v23 = vunpack.i.l.bf16 %v1894_v21 }
 0x28d   : > { %1110 = vmatpush.msrb.mxu1 %v1895_v23 }
 0x28f   : > { %1111 = vmatpush.msrb.mxu1 %v1896_v22 }
 0x2e7   : > { %v889_v27 = vpop.f32.mrf.mxu2 }
 0x2e8   : > { %v890_v32 = vadd.f32 %v889_v27, %v870_v31 }
 0x2e9   : > { %v771_v24 = vpop.f32.mrf.mxu3 }
 0x2ea   : > { %1698 = vmatmul.msk.f32.vlgmr.msra.gmra.mxu2 %vm699_vm1, %v771_v24  ;;  %961 = vmatpush.msra.mxu0 %v890_v32  ;;  %v1899_v24 = vpop.permute.xlu2 %1898 }
 0x2ec   : > { %1075 = vmatpush.msrb.mxu0 %v1880_v37 }
 0x2ee   : > { %1076 = vmatpush.msrb.mxu0 %v1885_v41 }
 0x2f1   : > { %v915_v25 = vpop.f32.mrf.mxu3 }
 0x2f2   : > { %v918_v26 = vsel %vm699_vm1, %v915_v25, -inf  ;;  %v1904_v16 = vpop.permute.xlu2 %1903 }
 0x2f3   : > { %919 = vmax.xlane.f32.xlu1 %v918_v26  ;;  %v1901_v26 = vunpack.i.h.bf16 %v1899_v24 }
 0x301   : > { %v1045_v12 = vpop.f32.mrf.mxu3 }
 0x30c   : > { %1888 = vrot.lane.b32.xlu1 %v2655_v28, %s2297_s1  ;;  %v1905_v28 = vunpack.i.l.bf16 %v1904_v16 }
 0x366   : > { %v920_v2 = vpop.xlane.xlu1 %919 }
 0x367   : > { %v921_v3 = vsub.f32 %v915_v25, %v920_v2  ;;  %v1900_v25 = vunpack.i.l.bf16 %v1899_v24  ;;  %v1096_v2 = vpop.permute.xlu2 %1095 }
 0x369   : > { %v922_v6 = vmul.f32 1.442695, %v921_v3  ;;  %1112 = vmatpush.msrb.mxu1 %v1900_v25 }
 0x36b   : > { %1940 = vpow2.f32 %v922_v6  ;;  %1113 = vmatpush.msrb.mxu1 %v1901_v26 }
 0x36d   : > { %v2691_v17 = vpop.f32.mrf.mxu2 }
 0x36f   : > { %v1909_v6 = vpop.permute.xlu2 %1908 }
 0x371   : > { %v1941_v34 = vpop.eup %1940 }
 0x372   : > { %v924_v35 = vsel %vm699_vm1, %v1941_v34, 0.0 }
 0x373   : > { %925 = vadd.xlane.f32.xlu0 %v924_v35  ;;  %v1911_v35 = vunpack.i.h.bf16 %v1909_v6 }
 0x37e   : > { %v1889_v38 = vpop.permute.xlu1 %1888 }
 0x37f   : > { %v1890_v42 = vunpack.i.l.bf16 %v1889_v38  ;;  %v1891_v43 = vunpack.i.h.bf16 %v1889_v38 }
 0x381   : > { %1077 = vmatpush.msrb.mxu0 %v1890_v42 }
 0x383   : > { %1078 = vmatpush.msrb.mxu0 %v1891_v43 }
 0x387   : > { %1025 = vrot.lane.b32.xlu0 %v2587_v11, %s2297_s1 }
 0x3e6   : > { %v926_v45 = vpop.xlane.xlu0 %925 }
 0x3e7   : > { %1942 = vrcp.f32 %v926_v45  ;;  %v938_v50 = vand.u32 2147483648, %v926_v45  ;;  %v936_v53 = vand.u32 2147483647, %v926_v45  ;;  %vm932_vm7 = vweird.f32 %v926_v45 }
 0x3e9   : > { %v939_v55 = vor.u32 1.1754944e-38, %v938_v50  ;;  %vm937_vm9 = vcmp.eq.f32.partialorder %v936_v53, 8.507059e+37 }
 0x3ed   : > { %v1943_v46 = vpop.eup %1942 }
 0x3ee   : > { %v928_v47 = vmul.f32 %v1943_v46, %v926_v45  ;;  %vm933_vm6 = vweird.f32 %v1943_v46 }
 0x3ef   : > { %vm934_vm8 = vmor %vm932_vm7, %vm933_vm6 }
 0x3f0   : > { %v929_v48 = vsub.f32 1.0, %v928_v47 }
 0x3f2   : > { %v930_v52 = vmul.f32 %v1943_v46, %v929_v48 }
 0x3f4   : > { %v931_v54 = vadd.f32 %v1943_v46, %v930_v52 }
 0x3f6   : > { %v935_v56 = vsel %vm934_vm8, %v1943_v46, %v931_v54 }
 0x3f7   : > { %v940_v57 = vsel %vm937_vm9, %v939_v55, %v935_v56 }
 0x3f8   : > { %v2678_v58 = vmul.f32 %v1941_v34, %v940_v57  ;;  %v1910_v34 = vunpack.i.l.bf16 %v1909_v6 }
 0x3f9   : > { %v1026_v62 = vpop.permute.xlu0 %1025 }
 0x3fa   : > { %1696 = vmatmul.msk.f32.vlgmr.msra.gmra.mxu0 %vm699_vm1, %v2678_v58  ;;  %v1046_v15 = vadd.f32 %v1045_v12, %v1026_v62  ;;  %v942_v48 = vadd.f32 %v2678_v58, %v2644_v63 }
 0x3fb   : > { %1211 = vmatpush.msra.mxu0 %v1192_v5 }
 0x402   : > { %1700 = vmatmul.msk.f32.vlgmr.msrb.gmra.mxu0 %vm613_vm0, %v2569_v8 }
 0x477   : > { %v963_v60 = vpop.f32.mrf.mxu0 }
 0x478   : > { %1697 = vmatmul.msk.f32.vlgmr.msra.gmra.mxu1 %vm699_vm1, %v963_v60 }
 0x47f   : > { %v1080_v13 = vpop.f32.mrf.mxu0 }
 0x480   : > { %v1081_v14 = vadd.f32 %v1080_v13, %v1061_v61  ;;  %1701 = vmatmul.msk.f32.vlgmr.msrb.gmra.mxu1 %vm613_vm0, %v2618_v30 }
 0x482   : > { %1702 = vmatpush.xpose.msk.msrb.mxu2 %vm699_vm1, %v1081_v14 }
 0x485   : > { %1703 = vmatmul.msk.f32.vlgmr.msrb.gmra.mxu2 %vm699_vm1, %v1046_v15 }
 0x486   : > { %1279 = vmatpush.msra.mxu2 %v1905_v28 }
 0x4f5   : > { %v2713_v4 = vpop.f32.mrf.mxu1 }
 0x4f6   : > { %v1011_v49 = vadd.f32 %v2691_v17, %v2713_v4  ;;  %v1396_v17 = vld [vmem:[#allocation13 + $0x18] sm:$0xff] }
 0x4fd   : > { %v1115_v3 = vpop.f32.mrf.mxu1 }
 0x4fe   : > { %v1116_v29 = vadd.f32 %v1115_v3, %v1096_v2 }
 0x500   : > { %1187 = vmatpush.msra.mxu3 %v1116_v29 }
 0x508   : > { %v1141_v18 = vpop.f32.mrf.mxu2 }
 0x509   : > { %v1144_v20 = vsel %vm699_vm1, %v1141_v18, -inf }
 0x50a   : > { %1145 = vmax.xlane.f32.xlu1 %v1144_v20 }
 0x523   : > { %1264 = vrot.lane.b32.xlu1 %v2582_v10, %s2298_s17 }
 0x52b   : > { %1299 = vrot.lane.b32.xlu1 %v2630_v44, %s2298_s17  ;;  %v1906_v44 = vunpack.i.h.bf16 %v1904_v16 }
 0x52d   : > { %1280 = vmatpush.msra.mxu2 %v1906_v44 }
 0x52f   : > { %1281 = vmatpush.msra.mxu2 %v1910_v34 }
 0x531   : > { %1282 = vmatpush.msra.mxu2 %v1911_v35 }
 0x532   : > { %1707 = vmatmul.msk.f32.vlgmr.msra.gmra.mxu2 %vm613_vm0, %v2569_v8 }
 0x533   : > { %1415 = vmatpush.msrb.mxu2 %v1396_v17 }
 0x57d   : > { %v1146_v10 = vpop.xlane.xlu1 %1145 }
 0x57e   : > { %v1147_v27 = vsub.f32 %v1141_v18, %v1146_v10 }
 0x580   : > { %v1148_v31 = vmul.f32 1.442695, %v1147_v27 }
 0x582   : > { %1944 = vpow2.f32 %v1148_v31 }
 0x588   : > { %v1945_v32 = vpop.eup %1944 }
 0x589   : > { %v1150_v33 = vsel %vm699_vm1, %v1945_v32, 0.0 }
 0x58a   : > { %1151 = vadd.xlane.f32.xlu0 %v1150_v33 }
 0x595   : > { %v1265_v53 = vpop.permute.xlu1 %1264 }
 0x59d   : > { %v1300_v24 = vpop.permute.xlu1 %1299 }
 0x59e   : > { %1229 = vrot.lane.b32.xlu0 %v2587_v11, %s2298_s17  ;;  %v1914_v11 = vpop.permute.xlu2 %1913 }
 0x59f   : > { %v1916_v19 = vunpack.i.h.bf16 %v1914_v11  ;;  %v1915_v0 = vunpack.i.l.bf16 %v1914_v11 }
 0x5a1   : > { %1244 = vmatpush.msra.mxu1 %v1915_v0 }
 0x5a3   : > { %1245 = vmatpush.msra.mxu1 %v1916_v19 }
 0x5a6   : > { %v1919_v36 = vpop.permute.xlu2 %1918 }
 0x5a7   : > { %v1921_v1 = vunpack.i.h.bf16 %v1919_v36  ;;  %v1920_v7 = vunpack.i.l.bf16 %v1919_v36 }
 0x5a9   : > { %1246 = vmatpush.msra.mxu1 %v1920_v7 }
 0x5ab   : > { %1247 = vmatpush.msra.mxu1 %v1921_v1 }
 0x5ac   : > { %1706 = vmatmul.msk.f32.vlgmr.msra.gmra.mxu1 %vm613_vm0, %v2571_v9 }
 0x5ae   : > { %v1924_v58 = vpop.permute.xlu2 %1923 }
 0x5af   : > { %v1926_v59 = vunpack.i.h.bf16 %v1924_v58  ;;  %v1925_v60 = vunpack.i.l.bf16 %v1924_v58 }
 0x5b1   : > { %1314 = vmatpush.msrb.mxu3 %v1925_v60 }
 0x5b3   : > { %1315 = vmatpush.msrb.mxu3 %v1926_v59 }
 0x5b5   : > { %v1284_v52 = vpop.f32.mrf.mxu2 }
 0x5b6   : > { %v1285_v54 = vadd.f32 %v1284_v52, %v1265_v53  ;;  %v1929_v61 = vpop.permute.xlu2 %1928 }
 0x5b7   : > { %v1931_v62 = vunpack.i.h.bf16 %v1929_v61  ;;  %v1930_v12 = vunpack.i.l.bf16 %v1929_v61 }
 0x5b8   : > { %1709 = vmatpush.xpose.msk.msrb.mxu0 %vm699_vm1, %v1285_v54 }
 0x5b9   : > { %1316 = vmatpush.msrb.mxu3 %v1930_v12 }
 0x5bb   : > { %1317 = vmatpush.msrb.mxu3 %v1931_v62 }
 0x5fd   : > { %v1152_v37 = vpop.xlane.xlu0 %1151 }
 0x5fe   : > { %1946 = vrcp.f32 %v1152_v37  ;;  %v1164_v40 = vand.u32 2147483648, %v1152_v37  ;;  %v1162_v42 = vand.u32 2147483647, %v1152_v37  ;;  %vm1158_vm11 = vweird.f32 %v1152_v37 }
 0x600   : > { %v1165_v45 = vor.u32 1.1754944e-38, %v1164_v40  ;;  %vm1163_vm13 = vcmp.eq.f32.partialorder %v1162_v42, 8.507059e+37 }
 0x604   : > { %v1947_v38 = vpop.eup %1946 }
 0x605   : > { %v1154_v39 = vmul.f32 %v1947_v38, %v1152_v37  ;;  %vm1159_vm10 = vweird.f32 %v1947_v38 }
 0x606   : > { %vm1160_vm12 = vmor %vm1158_vm11, %vm1159_vm10 }
 0x607   : > { %v1155_v8 = vsub.f32 1.0, %v1154_v39 }
 0x609   : > { %v1156_v41 = vmul.f32 %v1947_v38, %v1155_v8 }
 0x60b   : > { %v1157_v43 = vadd.f32 %v1947_v38, %v1156_v41 }
 0x60d   : > { %v1161_v46 = vsel %vm1160_vm12, %v1947_v38, %v1157_v43 }
 0x60e   : > { %v1166_v47 = vsel %vm1163_vm13, %v1165_v45, %v1161_v46 }
 0x60f   : > { %v1167_v9 = vmul.f32 %v1945_v32, %v1166_v47 }
 0x610   : > { %v1230_v56 = vpop.permute.xlu0 %1229 }
 0x611   : > { %1704 = vmatmul.msk.f32.vlgmr.msra.gmra.mxu3 %vm699_vm1, %v1167_v9  ;;  %v1168_v50 = vadd.f32 %v1167_v9, %v942_v48 }
 0x619   : > { %1708 = vmatmul.msk.f32.vlgmr.msrb.gmra.mxu3 %vm613_vm0, %v2618_v30 }
 0x629   : > { %v1249_v63 = vpop.f32.mrf.mxu1 }
 0x62a   : > { %v1250_v57 = vadd.f32 %v1249_v63, %v1230_v56 }
 0x694   : > { %v1189_v55 = vpop.f32.mrf.mxu3 }
 0x695   : > { %1705 = vmatmul.msk.f32.vlgmr.msra.gmra.mxu0 %vm699_vm1, %v1189_v55 }
 0x69c   : > { %v1319_v30 = vpop.f32.mrf.mxu3 }
 0x69d   : > { %1710 = vmatmul.msk.f32.vlgmr.msrb.gmra.mxu0 %vm699_vm1, %v1250_v57  ;;  %v1320_v25 = vadd.f32 %v1319_v30, %v1300_v24 }
 0x69f   : > { %1391 = vmatpush.msrb.mxu1 %v1320_v25 }
 0x712   : > { %v1213_v51 = vpop.f32.mrf.mxu0 }
 0x713   : > { %v2733_v13 = vadd.f32 %v1213_v51, %v1011_v49 }
 0x71a   : > { %v1345_v14 = vpop.f32.mrf.mxu0 }
 0x71b   : > { %v1348_v15 = vsel %vm699_vm1, %v1345_v14, -inf }
 0x71c   : > { %1349 = vmax.xlane.f32.xlu2 %v1348_v15 }
 0x78f   : > { %v1350_v18 = vpop.xlane.xlu2 %1349 }
 0x790   : > { %v1351_v20 = vsub.f32 %v1345_v14, %v1350_v18 }
 0x792   : > { %v1352_v21 = vmul.f32 1.442695, %v1351_v20 }
 0x794   : > { %1948 = vpow2.f32 %v1352_v21 }
 0x79a   : > { %v1949_v22 = vpop.eup %1948 }
 0x79b   : > { %v1354_v23 = vsel %vm699_vm1, %v1949_v22, 0.0 }
 0x79c   : > { %1355 = vadd.xlane.f32.xlu0 %v1354_v23 }
 0x80f   : > { %v1356_v26 = vpop.xlane.xlu0 %1355 }
 0x810   : > { %1950 = vrcp.f32 %v1356_v26  ;;  %v1368_v32 = vand.u32 2147483648, %v1356_v26  ;;  %v1366_v16 = vand.u32 2147483647, %v1356_v26  ;;  %vm1362_vm15 = vweird.f32 %v1356_v26 }
 0x812   : > { %v1369_v28 = vor.u32 1.1754944e-38, %v1368_v32  ;;  %vm1367_vm3 = vcmp.eq.f32.partialorder %v1366_v16, 8.507059e+37 }
 0x816   : > { %v1951_v10 = vpop.eup %1950 }
 0x817   : > { %v1358_v27 = vmul.f32 %v1951_v10, %v1356_v26  ;;  %vm1363_vm14 = vweird.f32 %v1951_v10 }
 0x818   : > { %vm1364_vm2 = vmor %vm1362_vm15, %vm1363_vm14 }
 0x819   : > { %v1359_v31 = vsub.f32 1.0, %v1358_v27 }
 0x81b   : > { %v1360_v33 = vmul.f32 %v1951_v10, %v1359_v31 }
 0x81d   : > { %v1361_v44 = vadd.f32 %v1951_v10, %v1360_v33 }
 0x81f   : > { %v1365_v4 = vsel %vm1364_vm2, %v1951_v10, %v1361_v44 }
 0x820   : > { %v1370_v2 = vsel %vm1367_vm3, %v1369_v28, %v1365_v4 }
 0x821   : > { %v1371_v3 = vmul.f32 %v1949_v22, %v1370_v2 }
 0x823   : > { %v1372_v29 = vadd.f32 %v1371_v3, %v1168_v50  ;;  %1711 = vmatmul.msk.f32.vlgmr.msrb.gmra.mxu1 %vm699_vm1, %v1371_v3 }
 0x825   : > { %v1427_v6 = vmul.f32 0.25, %v1372_v29 }
 0x827   : > { %1428 = vst.msk [vmem:[%s601_s11] sm:$0xff] %vm699_vm1, %v1427_v6 }
 0x8a0   : > { %v1393_v34 = vpop.f32.mrf.mxu1 }
 0x8a1   : > { %1712 = vmatmul.msk.f32.vlgmr.msrb.gmra.mxu2 %vm699_vm1, %v1393_v34 }
 0x8a2   : > { %2189 = shalt.err (!%p2186_p13)
}
 0x8a3   : > { %1742 = dma.vmem_to_hbm [thread:$0]  (%p2452_p2), %s1464_s5, 128, %s1466_s6, %s1435_s0  }
 0x8a4   : > { %s2857_s10 = sld [smem:[#allocation36_spill]]  ;;  %s594_s3 = scalar_lea.vmem [#allocation14], %s2524_s4 }
 0x8a5   : > { %s2858_s11 = sld [smem:[#allocation35_spill]]  ;;  %s1448_s25 = sshll.u32 %s594_s3, 4  ;;  %s1449_s25 = int_to_ptr.vmem [resolvable:$true] %s1448_s25 }
 0x8a6   : > { %s1430_s5 = scalar_lea.sflag [#allocation4], %s2521_s21 }
 0x8aa   : > { %s1446_s26 = scalar_lea.hbm %s2857_s10, %s1715_s14  ;;  %s2210_s4 = scalar_lea.hbm %s2857_s10, 16 }
 0x8ab   : > { %v1935_v35 = vld [vmem:[%s2858_s11] ss:$0 sm:$0xff]  ;;  %s1450_s16 = sshll.u32 %s1446_s26, 4  ;;  %s1451_s16 = int_to_ptr.hbm [resolvable:$true] %s1450_s16 }
 0x8ac   : > { %s2204_s6 = sshra.s32 %s1451_s16, 4  ;;  %s2205_s6 = int_to_ptr.hbm [resolvable:$true] %s2204_s6 }
 0x8ad   : > { %s2206_s14 = scalar_lea.hbm %s2205_s6, 8  ;;  %p2211_p8 = scmp.lt.s32.totalorder %s2205_s6, %s2857_s10 }
 0x8ae   : > { %p2207_p0 = scmp.ne.s32.totalorder %s2205_s6, %s2206_s14  ;;  %p2212_p1 = scmp.lt.s32.totalorder %s2210_s4, %s2206_s14 }
 0x8b0   : > { %p2208_p4 = pnand %p2207_p0, %p2452_p2  ;;  %p2213_p3 = por %p2212_p1, %p2211_p8 }
 0x8b2   : > { %p2209_p9 = pneg %p2208_p4 }
 0x8b4   : > { %p2214_p5 = pnand %p2213_p3, %p2209_p9 }
 0x924   : > { %v1417_v11 = vpop.f32.mrf.mxu2 }
 0x925   : > { %v1420_v19 = vadd.f32 %v1417_v11, %v2733_v13 }
 0x927   : > { %v1425_v0 = vadd.f32 %v1935_v35, %v1420_v19 }
 0x929   : > { %1426 = vst.msk [vmem:[%s594_s3] sm:$0xff] %vm613_vm0, %v1425_v0 }
 0x92a   : > { %2217 = shalt.err (!%p2214_p5)
}
 0x92b   : > { %1741 = dma.vmem_to_hbm [thread:$0]  (%p2452_p2), %s1449_s25, 128, %s1451_s16, %s1430_s5  }
 0x92c PF: > { %s2859_s21 = sld [smem:[#allocation23_spill]]  ;;  %p1769_p10 = pnand %p1668_p6, %p2459_p7 }
 0x92d   : > { %s2861_s24 = sld [smem:[#allocation25_spill]] }
 0x92e   : > { %p1770_p11 = pneg %p1769_p10 }
 0x932   : > { %s1477_s19 = sand.u32 1, %s2859_s21  }
 0x933   : > { %s1478_s15 = scalar_lea.sflag [#allocation4], %s1477_s19 }
 0x934   : > { %2259 = dma.done.wait (%p1770_p11), %s1478_s15, 128  }
 0x935   : > { %2261 = vsyncadd (%p1770_p11), %s1478_s15, 4294967168  ;;  %s1488_s20 = scalar_lea.sflag [#allocation16], %s1477_s19 }
 0x936   : > { %2263 = dma.done.wait (%p1770_p11), %s1488_s20, 128  }
 0x937   : > { %2265 = vsyncadd (%p1770_p11), %s1488_s20, 4294967168  ;;  %s37_s26 = sadd.s32 1, %s2861_s24   ;;  %s2862_s29 = sld [smem:[#allocation27_spill]] }
 0x938   : > { %p34_p12 = scmp.ge.s32.totalorder %s37_s26, 4   ;;  %s2863_s24 = sld [smem:[#allocation24_spill]] }
 0x939   : > { %s2864_s25 = sld [smem:[#allocation26_spill]]  ;;  %s2865_s21 = smov %s2272_s22 }
 0x93a   : > { %s2866_s22 = smov %s2276_s23  ;;  %36 = sbr.rel (!%p34_p12) target bundleno = 22 (0x16), region = 166 }
 0x93d   : > { %s2867_s23 = smov %s2862_s29 }
 0x93f   :  { %1494 = vsyncpa [#allocation3], 1 }
 0x940   :  { %1496 = vsyncpa [#allocation3 + $0x1], 1 }
 0x941   :  { %1497 = vsyncpa [#allocation6], 1 }
 0x942   :  { %1499 = vsyncpa [#allocation6 + $0x1], 1 }
 0x943   :  { %1500 = vsyncpa [#allocation9], 1 }
 0x944   :  { %1501 = vsyncpa [#allocation12], 1 }
 0x945   :  { %1502 = vsyncpa [#allocation4], 1 }
 0x946   :  { %1504 = vsyncpa [#allocation4 + $0x1], 1 }
 0x947   :  { %1505 = vsyncpa [#allocation16], 1 }
 0x948   :  { %1507 = vsyncpa [#allocation16 + $0x1], 1 }

</bundles_post_ra>
